<compile_context>
chip_gen: v7x
topology: tpu7x:2x2x1
jax: 0.10.0
libtpu: 0.0.40
codegen_flags: <defaults>
</compile_context>

<pallas_src>
import math

import jax
import jax.numpy as jnp
from jax.experimental import pallas as pl
from jax.experimental.pallas import tpu as pltpu

# MXU input dtype (accumulation is always f32).  bf16 halves weight DMA bytes and is native
# on v5e/v6e/v7x MXUs -- keep bf16 on all generations.
MATMUL_DTYPE = jnp.bfloat16

# On v7x (2 TensorCores/chip) set this to pltpu.CORE_PARALLEL to shard the batch-block grid
# axis across both cores.  "parallel" is safe on every generation, so it is the default here.
BATCH_DIM_SEMANTICS = "parallel"

_LAYER_PARAMS = ("ln1_w", "ln1_b", "w_qkv_t", "b_qkv", "w_o_t", "b_o",
                 "ln2_w", "ln2_b", "w_fc_t", "b_fc", "w_proj_t", "b_proj")


# ----------------------------- in-kernel helpers -------------------------------

def _layer_norm(x, w, b, eps=1e-5):
    # PyTorch nn.LayerNorm semantics (biased variance over last axis), f32 math.
    mu = jnp.mean(x, axis=-1, keepdims=True)
    var = jnp.mean(jnp.square(x - mu), axis=-1, keepdims=True)
    return (x - mu) * jax.lax.rsqrt(var + eps) * w + b


def _mm(a, b):
    # bf16-in / f32-accumulate MXU matmul.
    return jnp.dot(a.astype(MATMUL_DTYPE), b.astype(MATMUL_DTYPE),
                   preferred_element_type=jnp.float32)


def _swap01(x, pattern):
    # 3-D transpose of the leading two dims (minor dim untouched) -> XLU relayout.
    if hasattr(pltpu, "einshape"):
        return pltpu.einshape(pattern, x)
    return jnp.swapaxes(x, 0, 1)


# ----------------------------- fused encoder kernel -----------------------------

def make_encoder_kernel(num_heads, num_layers, seq_valid):
    def kernel(eot_ref,                                   # scalar prefetch, SMEM (B,) int32
               x_ref, pos_ref,
               ln1w, ln1b, wqkv, bqkv, wo, bo,
               ln2w, ln2b, wfc, bfc, wproj, bproj,
               lnfw, lnfb, proj,
               out_ref,
               x_scr, bias_scr):
        bblk = pl.program_id(0)
        l = pl.program_id(1)
        Bt, S, D = x_scr.shape
        H = num_heads
        hd = D // H
        N = Bt * S                                        # flattened rows for dense matmuls
        G = H * Bt                                        # merged attention batch dim
        scale = 1.0 / math.sqrt(hd)

        # Layer 0: load the prompt block, add positional embedding, build the causal bias.
        @pl.when(l == 0)
        def _():
            x_scr[...] = x_ref[...] + pos_ref[...][None, :, :]
            rows = jax.lax.broadcasted_iota(jnp.int32, (S, S), 0)
            cols = jax.lax.broadcasted_iota(jnp.int32, (S, S), 1)
            ok = (rows >= cols) & (cols < seq_valid)      # causal + padded-key validity
            bias_scr[...] = jnp.where(ok, 0.0, -1e30).astype(jnp.float32)

        x = x_scr[...].reshape(N, D)                      # VMEM-resident activations

        # ---- pre-LN multi-head causal self-attention ----------------------------
        h = _layer_norm(x, ln1w[0], ln1b[0])
        qkv = _mm(h, wqkv[0]) + bqkv[0]                   # (N, 3D)  one fat fused QKV matmul

        def to_heads(m2d):
            # (N, D) -> (G, S, hd) with g = h*Bt + b (order only has to be consistent).
            m3 = m2d.reshape(N, H, hd)                    # minor split D -> (H, hd)
            mh = _swap01(m3, "nhd->hnd")                  # (H, N, hd)  single XLU transpose
            return mh.reshape(G, S, hd)                   # leading regroup, free

        q = to_heads(qkv[:, 0:D]).astype(MATMUL_DTYPE)
        k = to_heads(qkv[:, D:2 * D]).astype(MATMUL_DTYPE)
        v = to_heads(qkv[:, 2 * D:3 * D]).astype(MATMUL_DTYPE)

        # Batched (over G = Bt*H) attention: scores, masked softmax, PV.
        s = jnp.einsum('gqd,gkd->gqk', q, k,
                       preferred_element_type=jnp.float32)            # (G, S, S)
        s = s * scale + bias_scr[...][None, :, :]
        s = s - jnp.max(s, axis=-1, keepdims=True)
        p = jnp.exp(s)
        p = p * pl.reciprocal(jnp.sum(p, axis=-1, keepdims=True), approx=True)

        o = jnp.einsum('gqk,gkd->gqd', p.astype(MATMUL_DTYPE), v,
                       preferred_element_type=jnp.float32)            # (G, S, hd)

        # Merge heads back to (N, D) and do ONE K=D output projection matmul.
        o2d = _swap01(o.reshape(H, N, hd), "hnd->nhd").reshape(N, D)
        x = x + _mm(o2d, wo[0]) + bo[0]

        # ---- MLP with QuickGELU --------------------------------------------------
        h = _layer_norm(x, ln2w[0], ln2b[0])
        h = _mm(h, wfc[0]) + bfc[0]
        h = h * jax.nn.sigmoid(1.702 * h)                 # QuickGELU (f32 VPU/EUP)
        x = x + (_mm(h, wproj[0]) + bproj[0])

        x_scr[...] = x.reshape(Bt, S, D)                  # stays resident for next layer

        # ---- last layer: ln_final on the EOT rows only + text projection ----------
        # NOTE: out_ref's block index depends only on the batch-block axis, so the block
        # stays VMEM-resident across the layer axis and is written back to HBM once after
        # the last layer (Pallas revisit semantics).  Keep the layer axis innermost.
        @pl.when(l == num_layers - 1)
        def _():
            rows = [x_scr[i, pl.ds(eot_ref[bblk * Bt + i], 1), :] for i in range(Bt)]
            eot_x = jnp.concatenate(rows, axis=0)         # (Bt, D)
            eot_x = _layer_norm(eot_x, lnfw[...], lnfb[...])
            y = jnp.dot(eot_x, proj[...], preferred_element_type=jnp.float32)   # f32 parity
            out_ref[...] = y[:, None, :].astype(out_ref.dtype)                  # (Bt, 1, E)

    return kernel


# ----------------------------- wrapper -----------------------------------------

def _vmem_capacity_bytes():
    try:
        return int(pltpu.get_tpu_info().vmem_capacity_bytes)
    except Exception:
        return 64 * 1024 * 1024          # conservative (v7x per-TC VMEM)


def _pick_block_batch(B, vmem_cap_bytes):
    # Amortize per-layer weight DMA over several batch rows.  Keep Bt modest on 64 MiB
    # VMEM parts (v7x); larger on 128 MiB parts (v5e/v6e).  Use a divisor of B to avoid
    # remainder handling.
    target = 16 if vmem_cap_bytes >= 96 * 1024 * 1024 else 8
    bt = 1
    for d in range(1, min(B, target) + 1):
        if B % d == 0:
            bt = d
    return bt


def _vmem_limit_bytes(params, prompts_dtype, L, Bt, S_pad, D, E, num_heads, vmem_cap):
    d_mlp = params["w_fc_t"].shape[-1]
    itemsize = jnp.dtype(prompts_dtype).itemsize
    # Per-grid-step input/output block bytes (double-buffered by the pipeline).
    blk = Bt * S_pad * D * itemsize                                   # prompts block
    blk += params["pos"].size * params["pos"].dtype.itemsize
    for name in _LAYER_PARAMS:
        a = params[name]
        blk += (a.size // L) * a.dtype.itemsize
    for name in ("lnf_w", "lnf_b", "text_proj"):
        a = params[name]
        blk += a.size * a.dtype.itemsize
    blk += Bt * 1 * E * 4                                             # output block
    scratch = Bt * S_pad * D * 4 + S_pad * S_pad * 4
    N = Bt * S_pad
    intermediates = 4 * (N * 3 * D                                    # qkv
                         + 3 * N * D                                  # q/k/v head copies
                         + num_heads * Bt * S_pad * S_pad             # scores
                         + N * d_mlp)                                 # MLP hidden
    est = 2 * blk + scratch + intermediates + (4 << 20)
    return int(min(max(est, 16 * 1024 * 1024), int(0.7 * vmem_cap)))


def text_encoder_forward(prompts, tokenized_prompts, params, num_heads, block_batch=None):
    # prompts: [B, S, D] float32, tokenized_prompts: [B, S] int32
    B, S, D = prompts.shape
    L = params["ln1_w"].shape[0]
    E = params["text_proj"].shape[-1]

    # Pad S to a sublane multiple so every tile is a full (8,128)-aligned block; the
    # padded key columns are masked out via the in-kernel bias.
    S_pad = ((S + 7) // 8) * 8
    pos = params["pos"]
    if S_pad != S:
        prompts = jnp.pad(prompts, ((0, 0), (0, S_pad - S), (0, 0)))
        pos = jnp.pad(pos, ((0, S_pad - S), (0, 0)))

    eot = jnp.argmax(tokenized_prompts, axis=-1).astype(jnp.int32)    # glue: EOT index prep

    vmem_cap = _vmem_capacity_bytes()
    Bt = _pick_block_batch(B, vmem_cap) if block_batch is None else block_batch
    assert B % Bt == 0

    operands = [prompts, pos] + \
               [params[name] for name in _LAYER_PARAMS] + \
               [params["lnf_w"], params["lnf_b"], params["text_proj"]]

    def layer_spec(shape):
        nd = len(shape)
        return pl.BlockSpec((1,) + tuple(shape[1:]),
                            lambda b, l, eot_ref, _nd=nd: (l,) + (0,) * (_nd - 1))

    def const_spec(shape):
        nd = len(shape)
        return pl.BlockSpec(tuple(shape), lambda b, l, eot_ref, _nd=nd: (0,) * _nd)

    in_specs = [pl.BlockSpec((Bt, S_pad, D), lambda b, l, eot_ref: (b, 0, 0)),   # prompts
                const_spec(pos.shape)]
    in_specs += [layer_spec(params[name].shape) for name in _LAYER_PARAMS]
    in_specs += [const_spec(params[name].shape)
                 for name in ("lnf_w", "lnf_b", "text_proj")]

    out_spec = pl.BlockSpec((Bt, 1, E), lambda b, l, eot_ref: (b, 0, 0))

    grid_spec = pltpu.PrefetchScalarGridSpec(
        num_scalar_prefetch=1,
        grid=(B // Bt, L),                # batch blocks outer (parallel), layers inner
        in_specs=in_specs,
        out_specs=out_spec,
        scratch_shapes=[pltpu.VMEM((Bt, S_pad, D), jnp.float32),     # resident activations
                        pltpu.VMEM((S_pad, S_pad), jnp.float32)],    # causal bias
    )

    out3 = pl.pallas_call(
        make_encoder_kernel(num_heads, L, S),
        out_shape=jax.ShapeDtypeStruct((B, 1, E), jnp.float32),
        grid_spec=grid_spec,
        compiler_params=pltpu.CompilerParams(
            dimension_semantics=(BATCH_DIM_SEMANTICS, "arbitrary"),
            vmem_limit_bytes=_vmem_limit_bytes(params, prompts.dtype, L, Bt, S_pad,
                                               D, E, num_heads, vmem_cap),
        ),
    )(eot, *operands)
    return out3[:, 0, :]


# ----------------------------- deterministic synthetic params ------------------

def init_params(key, num_layers, d_model, d_mlp, seq_len, embed_dim, num_heads):
    assert d_model % num_heads == 0
    scale = 0.02
    keys = jax.random.split(key, num_layers + 1)
    per_layer = {name: [] for name in _LAYER_PARAMS}
    for li in range(num_layers):
        k = jax.random.split(keys[li], 8)
        w_qkv = scale * jax.random.normal(k[0], (3 * d_model, d_model), jnp.float32)
        w_o = scale * jax.random.normal(k[2], (d_model, d_model), jnp.float32)
        w_fc = scale * jax.random.normal(k[4], (d_mlp, d_model), jnp.float32)
        w_proj = scale * jax.random.normal(k[6], (d_model, d_mlp), jnp.float32)
        per_layer["ln1_w"].append(jnp.ones((1, d_model), jnp.float32))
        per_layer["ln1_b"].append(jnp.zeros((1, d_model), jnp.float32))
        # PyTorch Linear stores (out, in); y = x @ W.T + b  ->  pre-transpose once here.
        per_layer["w_qkv_t"].append(w_qkv.T.astype(MATMUL_DTYPE))              # (D, 3D)
        per_layer["b_qkv"].append(scale * jax.random.normal(k[1], (1, 3 * d_model), jnp.float32))
        per_layer["w_o_t"].append(w_o.T.astype(MATMUL_DTYPE))                  # (D, D)
        per_layer["b_o"].append(scale * jax.random.normal(k[3], (1, d_model), jnp.float32))
        per_layer["ln2_w"].append(jnp.ones((1, d_model), jnp.float32))
        per_layer["ln2_b"].append(jnp.zeros((1, d_model), jnp.float32))
        per_layer["w_fc_t"].append(w_fc.T.astype(MATMUL_DTYPE))                # (D, 4D)
        per_layer["b_fc"].append(scale * jax.random.normal(k[5], (1, d_mlp), jnp.float32))
        per_layer["w_proj_t"].append(w_proj.T.astype(MATMUL_DTYPE))            # (4D, D)
        per_layer["b_proj"].append(scale * jax.random.normal(k[7], (1, d_model), jnp.float32))
    params = {name: jnp.stack(vals, axis=0) for name, vals in per_layer.items()}
    kp, kt = jax.random.split(keys[-1])
    params.update(
        pos=scale * jax.random.normal(kp, (seq_len, d_model), jnp.float32),
        lnf_w=jnp.ones((1, d_model), jnp.float32),
        lnf_b=jnp.zeros((1, d_model), jnp.float32),
        # ln_final + text_projection kept f32 for parity with the PyTorch reference.
        text_proj=scale * jax.random.normal(kt, (d_model, embed_dim), jnp.float32),
    )
    return params


# ----------------------------- main --------------------------------------------

if __name__ == "__main__":
    B, S, D, H, E, L = 2, 8, 32, 4, 16, 2      # batch, seq, d_model, heads, embed_dim, layers

    key = jax.random.PRNGKey(0)
    kp, kt, kw = jax.random.split(key, 3)

    prompts = jax.random.normal(kp, (B, S, D), jnp.float32)            # learned prompt embeddings
    toks = jax.random.randint(kt, (B, S), 1, 1000).astype(jnp.int32)   # token ids
    eot_pos = jnp.array([5, 7], dtype=jnp.int32)
    toks = toks.at[jnp.arange(B), eot_pos].set(49407)                  # EOT has the max token id

    params = init_params(kw, L, D, 4 * D, S, E, H)

    out = text_encoder_forward(prompts, toks, params, num_heads=H)
    out = jax.block_until_ready(out)

    assert out.shape == (B, E) and out.dtype == jnp.float32
    assert bool(jnp.all(jnp.isfinite(out)))
    print("KERNEL_OK")
</pallas_src>

<mosaic_0001>
module attributes {stable_mosaic.version = 11 : i64} {
  func.func @kernel(%arg0: i32, %arg1: i32, %arg2: memref<2xi32, #tpu.memory_space<smem>>, %arg3: memref<2x8x32xf32, #tpu.memory_space<vmem>>, %arg4: memref<8x32xf32, #tpu.memory_space<vmem>>, %arg5: memref<1x1x32xf32, #tpu.memory_space<vmem>>, %arg6: memref<1x1x32xf32, #tpu.memory_space<vmem>>, %arg7: memref<1x32x96xbf16, #tpu.memory_space<vmem>>, %arg8: memref<1x1x96xf32, #tpu.memory_space<vmem>>, %arg9: memref<1x32x32xbf16, #tpu.memory_space<vmem>>, %arg10: memref<1x1x32xf32, #tpu.memory_space<vmem>>, %arg11: memref<1x1x32xf32, #tpu.memory_space<vmem>>, %arg12: memref<1x1x32xf32, #tpu.memory_space<vmem>>, %arg13: memref<1x32x128xbf16, #tpu.memory_space<vmem>>, %arg14: memref<1x1x128xf32, #tpu.memory_space<vmem>>, %arg15: memref<1x128x32xbf16, #tpu.memory_space<vmem>>, %arg16: memref<1x1x32xf32, #tpu.memory_space<vmem>>, %arg17: memref<1x32xf32, #tpu.memory_space<vmem>>, %arg18: memref<1x32xf32, #tpu.memory_space<vmem>>, %arg19: memref<32x16xf32, #tpu.memory_space<vmem>>, %arg20: memref<2x1x16xf32, #tpu.memory_space<vmem>>, %arg21: memref<2x8x32xf32, #tpu.memory_space<vmem>>, %arg22: memref<8x8xf32, #tpu.memory_space<vmem>>) attributes {dimension_semantics = [#tpu.dimension_semantics<parallel>, #tpu.dimension_semantics<arbitrary>], iteration_bounds = array<i64: 1, 2>, scalar_prefetch = 1 : i64, scratch_operands = 2 : i64, tpu.core_type = #tpu.core_type<tc>, window_params = [{transform_indices = @transform_0, window_bounds = array<i64: 2, 8, 32>}, {pipeline_mode = #tpu.pipeline_mode<synchronous>, transform_indices = @transform_1, window_bounds = array<i64: 8, 32>}, {transform_indices = @transform_2, window_bounds = array<i64: 1, 1, 32>}, {transform_indices = @transform_3, window_bounds = array<i64: 1, 1, 32>}, {transform_indices = @transform_4, window_bounds = array<i64: 1, 32, 96>}, {transform_indices = @transform_5, window_bounds = array<i64: 1, 1, 96>}, {transform_indices = @transform_6, window_bounds = array<i64: 1, 32, 32>}, {transform_indices = @transform_7, window_bounds = array<i64: 1, 1, 32>}, {transform_indices = @transform_8, window_bounds = array<i64: 1, 1, 32>}, {transform_indices = @transform_9, window_bounds = array<i64: 1, 1, 32>}, {transform_indices = @transform_10, window_bounds = array<i64: 1, 32, 128>}, {transform_indices = @transform_11, window_bounds = array<i64: 1, 1, 128>}, {transform_indices = @transform_12, window_bounds = array<i64: 1, 128, 32>}, {transform_indices = @transform_13, window_bounds = array<i64: 1, 1, 32>}, {pipeline_mode = #tpu.pipeline_mode<synchronous>, transform_indices = @transform_14, window_bounds = array<i64: 1, 32>}, {pipeline_mode = #tpu.pipeline_mode<synchronous>, transform_indices = @transform_15, window_bounds = array<i64: 1, 32>}, {pipeline_mode = #tpu.pipeline_mode<synchronous>, transform_indices = @transform_16, window_bounds = array<i64: 32, 16>}, {transform_indices = @transform_17, window_bounds = array<i64: 2, 1, 16>}]} {
    %c0_i32 = arith.constant 0 : i32
    %0 = arith.cmpi eq, %arg1, %c0_i32 : i32
    %1 = arith.extui %0 : i1 to i32
    %c0_i32_0 = arith.constant 0 : i32
    %2 = arith.cmpi ne, %1, %c0_i32_0 : i32
    scf.if %2 {
      %c0_65 = arith.constant 0 : index
      %c0_66 = arith.constant 0 : index
      %c0_67 = arith.constant 0 : index
      %141 = vector.load %arg3[%c0_65, %c0_66, %c0_67] : memref<2x8x32xf32, #tpu.memory_space<vmem>>, vector<2x8x32xf32>
      %c0_68 = arith.constant 0 : index
      %c0_69 = arith.constant 0 : index
      %142 = vector.load %arg4[%c0_68, %c0_69] : memref<8x32xf32, #tpu.memory_space<vmem>>, vector<8x32xf32>
      %143 = vector.shape_cast %142 : vector<8x32xf32> to vector<1x8x32xf32>
      %144 = vector.broadcast %143 : vector<1x8x32xf32> to vector<2x8x32xf32>
      %145 = arith.addf %141, %144 : vector<2x8x32xf32>
      %c0_70 = arith.constant 0 : index
      %c0_71 = arith.constant 0 : index
      %c0_72 = arith.constant 0 : index
      %146 = vector.load %arg21[%c0_70, %c0_71, %c0_72] : memref<2x8x32xf32, #tpu.memory_space<vmem>>, vector<2x8x32xf32>
      tpu.vector_store %arg21[%c0_70, %c0_71, %c0_72], %145 {strides = array<i32>} : memref<2x8x32xf32, #tpu.memory_space<vmem>>, vector<2x8x32xf32>,
      %147 = tpu.iota {dimensions = array<i32: 0>} : vector<8x8xi32>
      %148 = tpu.iota {dimensions = array<i32: 1>} : vector<8x8xi32>
      %149 = arith.cmpi sge, %147, %148 : vector<8x8xi32>
      %c8_i32 = arith.constant 8 : i32
      %150 = vector.broadcast %c8_i32 : i32 to vector<8x8xi32>
      %151 = arith.cmpi slt, %148, %150 : vector<8x8xi32>
      %152 = arith.andi %149, %151 : vector<8x8xi1>
      %cst_73 = arith.constant 0.000000e+00 : f32
      %cst_74 = arith.constant -1.000000e+30 : f32
      %153 = vector.broadcast %cst_73 : f32 to vector<8x8xf32>
      %154 = vector.broadcast %cst_74 : f32 to vector<8x8xf32>
      %155 = arith.select %152, %153, %154 : vector<8x8xi1>, vector<8x8xf32>
      %c0_75 = arith.constant 0 : index
      %c0_76 = arith.constant 0 : index
      %156 = vector.load %arg22[%c0_75, %c0_76] : memref<8x8xf32, #tpu.memory_space<vmem>>, vector<8x8xf32>
      tpu.vector_store %arg22[%c0_75, %c0_76], %155 {strides = array<i32>} : memref<8x8xf32, #tpu.memory_space<vmem>>, vector<8x8xf32>,
    } else {
    }
    %c0 = arith.constant 0 : index
    %c0_1 = arith.constant 0 : index
    %c0_2 = arith.constant 0 : index
    %3 = vector.load %arg21[%c0, %c0_1, %c0_2] : memref<2x8x32xf32, #tpu.memory_space<vmem>>, vector<2x8x32xf32>
    %4 = vector.shape_cast %3 : vector<2x8x32xf32> to vector<16x32xf32>
    %c0_3 = arith.constant 0 : index
    %c0_4 = arith.constant 0 : index
    %c0_5 = arith.constant 0 : index
    %5 = vector.load %arg5[%c0_3, %c0_4, %c0_5] : memref<1x1x32xf32, #tpu.memory_space<vmem>>, vector<1x1x32xf32>
    %6 = vector.shape_cast %5 : vector<1x1x32xf32> to vector<1x32xf32>
    %c0_6 = arith.constant 0 : index
    %c0_7 = arith.constant 0 : index
    %c0_8 = arith.constant 0 : index
    %7 = vector.load %arg6[%c0_6, %c0_7, %c0_8] : memref<1x1x32xf32, #tpu.memory_space<vmem>>, vector<1x1x32xf32>
    %8 = vector.shape_cast %7 : vector<1x1x32xf32> to vector<1x32xf32>
    %cst = arith.constant dense<0.000000e+00> : vector<16xf32>
    %9 = vector.multi_reduction <add>, %4, %cst [1] : vector<16x32xf32> to vector<16xf32>
    %10 = vector.shape_cast %9 : vector<16xf32> to vector<16x1xf32>
    %cst_9 = arith.constant 3.200000e+01 : f32
    %11 = vector.broadcast %cst_9 : f32 to vector<16x1xf32>
    %12 = arith.divf %10, %11 : vector<16x1xf32>
    %13 = vector.broadcast %12 : vector<16x1xf32> to vector<16x32xf32>
    %14 = arith.subf %4, %13 : vector<16x32xf32>
    %15 = arith.mulf %14, %14 : vector<16x32xf32>
    %cst_10 = arith.constant dense<0.000000e+00> : vector<16xf32>
    %16 = vector.multi_reduction <add>, %15, %cst_10 [1] : vector<16x32xf32> to vector<16xf32>
    %17 = vector.shape_cast %16 : vector<16xf32> to vector<16x1xf32>
    %cst_11 = arith.constant 3.200000e+01 : f32
    %18 = vector.broadcast %cst_11 : f32 to vector<16x1xf32>
    %19 = arith.divf %17, %18 : vector<16x1xf32>
    %20 = vector.broadcast %12 : vector<16x1xf32> to vector<16x32xf32>
    %21 = arith.subf %4, %20 : vector<16x32xf32>
    %cst_12 = arith.constant 9.99999974E-6 : f32
    %22 = vector.broadcast %cst_12 : f32 to vector<16x1xf32>
    %23 = arith.addf %19, %22 : vector<16x1xf32>
    %24 = math.rsqrt %23 : vector<16x1xf32>
    %25 = vector.broadcast %24 : vector<16x1xf32> to vector<16x32xf32>
    %26 = arith.mulf %21, %25 : vector<16x32xf32>
    %27 = vector.broadcast %6 : vector<1x32xf32> to vector<16x32xf32>
    %28 = arith.mulf %26, %27 : vector<16x32xf32>
    %29 = vector.broadcast %8 : vector<1x32xf32> to vector<16x32xf32>
    %30 = arith.addf %28, %29 : vector<16x32xf32>
    %c0_13 = arith.constant 0 : index
    %c0_14 = arith.constant 0 : index
    %c0_15 = arith.constant 0 : index
    %31 = vector.load %arg7[%c0_13, %c0_14, %c0_15] : memref<1x32x96xbf16, #tpu.memory_space<vmem>>, vector<1x32x96xbf16>
    %32 = vector.shape_cast %31 : vector<1x32x96xbf16> to vector<32x96xbf16>
    %33 = arith.truncf %30 : vector<16x32xf32> to vector<16x32xbf16>
    %cst_16 = arith.constant dense<0.000000e+00> : vector<16x96xf32>
    %34 = tpu.matmul %33, %32, %cst_16 {dimension_numbers = #tpu.dot_dimension_numbers<[1], [0], [0], [1], [0, 0, 1, 1], [], []>} : vector<16x32xbf16>, vector<32x96xbf16>, vector<16x96xf32> -> vector<16x96xf32>
    %c0_17 = arith.constant 0 : index
    %c0_18 = arith.constant 0 : index
    %c0_19 = arith.constant 0 : index
    %35 = vector.load %arg8[%c0_17, %c0_18, %c0_19] : memref<1x1x96xf32, #tpu.memory_space<vmem>>, vector<1x1x96xf32>
    %36 = vector.shape_cast %35 : vector<1x1x96xf32> to vector<1x96xf32>
    %37 = vector.broadcast %36 : vector<1x96xf32> to vector<16x96xf32>
    %38 = arith.addf %34, %37 : vector<16x96xf32>
    %39 = vector.extract_strided_slice %38 {offsets = [0, 0], sizes = [16, 32], strides = [1, 1]} : vector<16x96xf32> to vector<16x32xf32>
    %40 = vector.shape_cast %39 : vector<16x32xf32> to vector<16x4x8xf32>
    %41 = tpu.transpose %40, [1, 0, 2] : vector<16x4x8xf32> -> vector<4x16x8xf32>
    %42 = vector.shape_cast %41 : vector<4x16x8xf32> to vector<8x8x8xf32>
    %43 = arith.truncf %42 : vector<8x8x8xf32> to vector<8x8x8xbf16>
    %44 = vector.extract_strided_slice %38 {offsets = [0, 32], sizes = [16, 32], strides = [1, 1]} : vector<16x96xf32> to vector<16x32xf32>
    %45 = vector.shape_cast %44 : vector<16x32xf32> to vector<16x4x8xf32>
    %46 = tpu.transpose %45, [1, 0, 2] : vector<16x4x8xf32> -> vector<4x16x8xf32>
    %47 = vector.shape_cast %46 : vector<4x16x8xf32> to vector<8x8x8xf32>
    %48 = arith.truncf %47 : vector<8x8x8xf32> to vector<8x8x8xbf16>
    %49 = vector.extract_strided_slice %38 {offsets = [0, 64], sizes = [16, 32], strides = [1, 1]} : vector<16x96xf32> to vector<16x32xf32>
    %50 = vector.shape_cast %49 : vector<16x32xf32> to vector<16x4x8xf32>
    %51 = tpu.transpose %50, [1, 0, 2] : vector<16x4x8xf32> -> vector<4x16x8xf32>
    %52 = vector.shape_cast %51 : vector<4x16x8xf32> to vector<8x8x8xf32>
    %53 = arith.truncf %52 : vector<8x8x8xf32> to vector<8x8x8xbf16>
    "tpu.trace_start"() <{level = 10 : i32, message = "gqd,gkd->gqk"}> : () -> ()
    %cst_20 = arith.constant dense<0.000000e+00> : vector<8x8x8xf32>
    %54 = tpu.matmul %43, %48, %cst_20 {dimension_numbers = #tpu.dot_dimension_numbers<[2], [2], [1], [1], [0, 0, 0, 1, 1, 1], [0], [0]>} : vector<8x8x8xbf16>, vector<8x8x8xbf16>, vector<8x8x8xf32> -> vector<8x8x8xf32>
    "tpu.trace_stop"() : () -> ()
    %cst_21 = arith.constant 0.353553385 : f32
    %55 = vector.broadcast %cst_21 : f32 to vector<8x8x8xf32>
    %56 = arith.mulf %54, %55 : vector<8x8x8xf32>
    %c0_22 = arith.constant 0 : index
    %c0_23 = arith.constant 0 : index
    %57 = vector.load %arg22[%c0_22, %c0_23] : memref<8x8xf32, #tpu.memory_space<vmem>>, vector<8x8xf32>
    %58 = vector.shape_cast %57 : vector<8x8xf32> to vector<1x8x8xf32>
    %59 = vector.broadcast %58 : vector<1x8x8xf32> to vector<8x8x8xf32>
    %60 = arith.addf %56, %59 : vector<8x8x8xf32>
    %cst_24 = arith.constant dense<0xFF800000> : vector<8x8xf32>
    %61 = vector.multi_reduction <maximumf>, %60, %cst_24 [2] : vector<8x8x8xf32> to vector<8x8xf32>
    %62 = vector.shape_cast %61 : vector<8x8xf32> to vector<8x8x1xf32>
    %63 = vector.broadcast %62 : vector<8x8x1xf32> to vector<8x8x8xf32>
    %64 = arith.subf %60, %63 : vector<8x8x8xf32>
    %65 = math.exp %64 : vector<8x8x8xf32>
    %cst_25 = arith.constant dense<0.000000e+00> : vector<8x8xf32>
    %66 = vector.multi_reduction <add>, %65, %cst_25 [2] : vector<8x8x8xf32> to vector<8x8xf32>
    %67 = vector.shape_cast %66 : vector<8x8xf32> to vector<8x8x1xf32>
    %68 = tpu.reciprocal %67 {approx = true} : vector<8x8x1xf32> -> vector<8x8x1xf32>
    %69 = vector.broadcast %68 : vector<8x8x1xf32> to vector<8x8x8xf32>
    %70 = arith.mulf %65, %69 : vector<8x8x8xf32>
    %71 = arith.truncf %70 : vector<8x8x8xf32> to vector<8x8x8xbf16>
    "tpu.trace_start"() <{level = 10 : i32, message = "gqk,gkd->gqd"}> : () -> ()
    %cst_26 = arith.constant dense<0.000000e+00> : vector<8x8x8xf32>
    %72 = tpu.matmul %71, %53, %cst_26 {dimension_numbers = #tpu.dot_dimension_numbers<[2], [1], [1], [2], [0, 0, 0, 1, 1, 2], [0], [0]>} : vector<8x8x8xbf16>, vector<8x8x8xbf16>, vector<8x8x8xf32> -> vector<8x8x8xf32>
    "tpu.trace_stop"() : () -> ()
    %73 = vector.shape_cast %72 : vector<8x8x8xf32> to vector<4x16x8xf32>
    %74 = tpu.transpose %73, [1, 0, 2] : vector<4x16x8xf32> -> vector<16x4x8xf32>
    %75 = vector.shape_cast %74 : vector<16x4x8xf32> to vector<16x32xf32>
    %c0_27 = arith.constant 0 : index
    %c0_28 = arith.constant 0 : index
    %c0_29 = arith.constant 0 : index
    %76 = vector.load %arg9[%c0_27, %c0_28, %c0_29] : memref<1x32x32xbf16, #tpu.memory_space<vmem>>, vector<1x32x32xbf16>
    %77 = vector.shape_cast %76 : vector<1x32x32xbf16> to vector<32x32xbf16>
    %78 = arith.truncf %75 : vector<16x32xf32> to vector<16x32xbf16>
    %cst_30 = arith.constant dense<0.000000e+00> : vector<16x32xf32>
    %79 = tpu.matmul %78, %77, %cst_30 {dimension_numbers = #tpu.dot_dimension_numbers<[1], [0], [0], [1], [0, 0, 1, 1], [], []>} : vector<16x32xbf16>, vector<32x32xbf16>, vector<16x32xf32> -> vector<16x32xf32>
    %80 = arith.addf %4, %79 : vector<16x32xf32>
    %c0_31 = arith.constant 0 : index
    %c0_32 = arith.constant 0 : index
    %c0_33 = arith.constant 0 : index
    %81 = vector.load %arg10[%c0_31, %c0_32, %c0_33] : memref<1x1x32xf32, #tpu.memory_space<vmem>>, vector<1x1x32xf32>
    %82 = vector.shape_cast %81 : vector<1x1x32xf32> to vector<1x32xf32>
    %83 = vector.broadcast %82 : vector<1x32xf32> to vector<16x32xf32>
    %84 = arith.addf %80, %83 : vector<16x32xf32>
    %c0_34 = arith.constant 0 : index
    %c0_35 = arith.constant 0 : index
    %c0_36 = arith.constant 0 : index
    %85 = vector.load %arg11[%c0_34, %c0_35, %c0_36] : memref<1x1x32xf32, #tpu.memory_space<vmem>>, vector<1x1x32xf32>
    %86 = vector.shape_cast %85 : vector<1x1x32xf32> to vector<1x32xf32>
    %c0_37 = arith.constant 0 : index
    %c0_38 = arith.constant 0 : index
    %c0_39 = arith.constant 0 : index
    %87 = vector.load %arg12[%c0_37, %c0_38, %c0_39] : memref<1x1x32xf32, #tpu.memory_space<vmem>>, vector<1x1x32xf32>
    %88 = vector.shape_cast %87 : vector<1x1x32xf32> to vector<1x32xf32>
    %cst_40 = arith.constant dense<0.000000e+00> : vector<16xf32>
    %89 = vector.multi_reduction <add>, %84, %cst_40 [1] : vector<16x32xf32> to vector<16xf32>
    %90 = vector.shape_cast %89 : vector<16xf32> to vector<16x1xf32>
    %cst_41 = arith.constant 3.200000e+01 : f32
    %91 = vector.broadcast %cst_41 : f32 to vector<16x1xf32>
    %92 = arith.divf %90, %91 : vector<16x1xf32>
    %93 = vector.broadcast %92 : vector<16x1xf32> to vector<16x32xf32>
    %94 = arith.subf %84, %93 : vector<16x32xf32>
    %95 = arith.mulf %94, %94 : vector<16x32xf32>
    %cst_42 = arith.constant dense<0.000000e+00> : vector<16xf32>
    %96 = vector.multi_reduction <add>, %95, %cst_42 [1] : vector<16x32xf32> to vector<16xf32>
    %97 = vector.shape_cast %96 : vector<16xf32> to vector<16x1xf32>
    %cst_43 = arith.constant 3.200000e+01 : f32
    %98 = vector.broadcast %cst_43 : f32 to vector<16x1xf32>
    %99 = arith.divf %97, %98 : vector<16x1xf32>
    %100 = vector.broadcast %92 : vector<16x1xf32> to vector<16x32xf32>
    %101 = arith.subf %84, %100 : vector<16x32xf32>
    %cst_44 = arith.constant 9.99999974E-6 : f32
    %102 = vector.broadcast %cst_44 : f32 to vector<16x1xf32>
    %103 = arith.addf %99, %102 : vector<16x1xf32>
    %104 = math.rsqrt %103 : vector<16x1xf32>
    %105 = vector.broadcast %104 : vector<16x1xf32> to vector<16x32xf32>
    %106 = arith.mulf %101, %105 : vector<16x32xf32>
    %107 = vector.broadcast %86 : vector<1x32xf32> to vector<16x32xf32>
    %108 = arith.mulf %106, %107 : vector<16x32xf32>
    %109 = vector.broadcast %88 : vector<1x32xf32> to vector<16x32xf32>
    %110 = arith.addf %108, %109 : vector<16x32xf32>
    %c0_45 = arith.constant 0 : index
    %c0_46 = arith.constant 0 : index
    %c0_47 = arith.constant 0 : index
    %111 = vector.load %arg13[%c0_45, %c0_46, %c0_47] : memref<1x32x128xbf16, #tpu.memory_space<vmem>>, vector<1x32x128xbf16>
    %112 = vector.shape_cast %111 : vector<1x32x128xbf16> to vector<32x128xbf16>
    %113 = arith.truncf %110 : vector<16x32xf32> to vector<16x32xbf16>
    %cst_48 = arith.constant dense<0.000000e+00> : vector<16x128xf32>
    %114 = tpu.matmul %113, %112, %cst_48 {dimension_numbers = #tpu.dot_dimension_numbers<[1], [0], [0], [1], [0, 0, 1, 1], [], []>} : vector<16x32xbf16>, vector<32x128xbf16>, vector<16x128xf32> -> vector<16x128xf32>
    %c0_49 = arith.constant 0 : index
    %c0_50 = arith.constant 0 : index
    %c0_51 = arith.constant 0 : index
    %115 = vector.load %arg14[%c0_49, %c0_50, %c0_51] : memref<1x1x128xf32, #tpu.memory_space<vmem>>, vector<1x1x128xf32>
    %116 = vector.shape_cast %115 : vector<1x1x128xf32> to vector<1x128xf32>
    %117 = vector.broadcast %116 : vector<1x128xf32> to vector<16x128xf32>
    %118 = arith.addf %114, %117 : vector<16x128xf32>
    %cst_52 = arith.constant 1.702000e+00 : f32
    %119 = vector.broadcast %cst_52 : f32 to vector<16x128xf32>
    %120 = arith.mulf %119, %118 : vector<16x128xf32>
    %121 = arith.negf %120 : vector<16x128xf32>
    %122 = math.exp %121 : vector<16x128xf32>
    %cst_53 = arith.constant 1.000000e+00 : f32
    %123 = vector.broadcast %cst_53 : f32 to vector<16x128xf32>
    %124 = arith.addf %123, %122 : vector<16x128xf32>
    %125 = arith.divf %123, %124 : vector<16x128xf32>
    %126 = arith.mulf %118, %125 : vector<16x128xf32>
    %c0_54 = arith.constant 0 : index
    %c0_55 = arith.constant 0 : index
    %c0_56 = arith.constant 0 : index
    %127 = vector.load %arg15[%c0_54, %c0_55, %c0_56] : memref<1x128x32xbf16, #tpu.memory_space<vmem>>, vector<1x128x32xbf16>
    %128 = vector.shape_cast %127 : vector<1x128x32xbf16> to vector<128x32xbf16>
    %129 = arith.truncf %126 : vector<16x128xf32> to vector<16x128xbf16>
    %cst_57 = arith.constant dense<0.000000e+00> : vector<16x32xf32>
    %130 = tpu.matmul %129, %128, %cst_57 {dimension_numbers = #tpu.dot_dimension_numbers<[1], [0], [0], [1], [0, 0, 1, 1], [], []>} : vector<16x128xbf16>, vector<128x32xbf16>, vector<16x32xf32> -> vector<16x32xf32>
    %c0_58 = arith.constant 0 : index
    %c0_59 = arith.constant 0 : index
    %c0_60 = arith.constant 0 : index
    %131 = vector.load %arg16[%c0_58, %c0_59, %c0_60] : memref<1x1x32xf32, #tpu.memory_space<vmem>>, vector<1x1x32xf32>
    %132 = vector.shape_cast %131 : vector<1x1x32xf32> to vector<1x32xf32>
    %133 = vector.broadcast %132 : vector<1x32xf32> to vector<16x32xf32>
    %134 = arith.addf %130, %133 : vector<16x32xf32>
    %135 = arith.addf %84, %134 : vector<16x32xf32>
    %136 = vector.shape_cast %135 : vector<16x32xf32> to vector<2x8x32xf32>
    %c0_61 = arith.constant 0 : index
    %c0_62 = arith.constant 0 : index
    %c0_63 = arith.constant 0 : index
    %137 = vector.load %arg21[%c0_61, %c0_62, %c0_63] : memref<2x8x32xf32, #tpu.memory_space<vmem>>, vector<2x8x32xf32>
    tpu.vector_store %arg21[%c0_61, %c0_62, %c0_63], %136 {strides = array<i32>} : memref<2x8x32xf32, #tpu.memory_space<vmem>>, vector<2x8x32xf32>,
    %c1_i32 = arith.constant 1 : i32
    %138 = arith.cmpi eq, %arg1, %c1_i32 : i32
    %139 = arith.extui %138 : i1 to i32
    %c0_i32_64 = arith.constant 0 : i32
    %140 = arith.cmpi ne, %139, %c0_i32_64 : i32
    scf.if %140 {
      %c2_i32 = arith.constant 2 : i32
      %141 = arith.muli %arg0, %c2_i32 : i32
      %c0_i32_65 = arith.constant 0 : i32
      %142 = arith.addi %141, %c0_i32_65 : i32
      %143 = arith.index_cast %142 : i32 to index
      %144 = memref.load %arg2[%143] : memref<2xi32, #tpu.memory_space<smem>>
      %c0_66 = arith.constant 0 : index
      %145 = arith.index_cast %144 : i32 to index
      %c0_67 = arith.constant 0 : index
      %146 = vector.load %arg21[%c0_66, %145, %c0_67] : memref<2x8x32xf32, #tpu.memory_space<vmem>>, vector<1x1x32xf32>
      %147 = vector.shape_cast %146 : vector<1x1x32xf32> to vector<1x32xf32>
      %c2_i32_68 = arith.constant 2 : i32
      %148 = arith.muli %arg0, %c2_i32_68 : i32
      %c1_i32_69 = arith.constant 1 : i32
      %149 = arith.addi %148, %c1_i32_69 : i32
      %150 = arith.index_cast %149 : i32 to index
      %151 = memref.load %arg2[%150] : memref<2xi32, #tpu.memory_space<smem>>
      %c1 = arith.constant 1 : index
      %152 = arith.index_cast %151 : i32 to index
      %c0_70 = arith.constant 0 : index
      %153 = vector.load %arg21[%c1, %152, %c0_70] : memref<2x8x32xf32, #tpu.memory_space<vmem>>, vector<1x1x32xf32>
      %154 = vector.shape_cast %153 : vector<1x1x32xf32> to vector<1x32xf32>
      %155 = tpu.concatenate %147, %154 in 0 : vector<1x32xf32>, vector<1x32xf32> -> vector<2x32xf32>
      %c0_71 = arith.constant 0 : index
      %c0_72 = arith.constant 0 : index
      %156 = vector.load %arg17[%c0_71, %c0_72] : memref<1x32xf32, #tpu.memory_space<vmem>>, vector<1x32xf32>
      %c0_73 = arith.constant 0 : index
      %c0_74 = arith.constant 0 : index
      %157 = vector.load %arg18[%c0_73, %c0_74] : memref<1x32xf32, #tpu.memory_space<vmem>>, vector<1x32xf32>
      %cst_75 = arith.constant dense<0.000000e+00> : vector<2xf32>
      %158 = vector.multi_reduction <add>, %155, %cst_75 [1] : vector<2x32xf32> to vector<2xf32>
      %159 = vector.shape_cast %158 : vector<2xf32> to vector<2x1xf32>
      %cst_76 = arith.constant 3.200000e+01 : f32
      %160 = vector.broadcast %cst_76 : f32 to vector<2x1xf32>
      %161 = arith.divf %159, %160 : vector<2x1xf32>
      %162 = vector.broadcast %161 : vector<2x1xf32> to vector<2x32xf32>
      %163 = arith.subf %155, %162 : vector<2x32xf32>
      %164 = arith.mulf %163, %163 : vector<2x32xf32>
      %cst_77 = arith.constant dense<0.000000e+00> : vector<2xf32>
      %165 = vector.multi_reduction <add>, %164, %cst_77 [1] : vector<2x32xf32> to vector<2xf32>
      %166 = vector.shape_cast %165 : vector<2xf32> to vector<2x1xf32>
      %cst_78 = arith.constant 3.200000e+01 : f32
      %167 = vector.broadcast %cst_78 : f32 to vector<2x1xf32>
      %168 = arith.divf %166, %167 : vector<2x1xf32>
      %169 = vector.broadcast %161 : vector<2x1xf32> to vector<2x32xf32>
      %170 = arith.subf %155, %169 : vector<2x32xf32>
      %cst_79 = arith.constant 9.99999974E-6 : f32
      %171 = vector.broadcast %cst_79 : f32 to vector<2x1xf32>
      %172 = arith.addf %168, %171 : vector<2x1xf32>
      %173 = math.rsqrt %172 : vector<2x1xf32>
      %174 = vector.broadcast %173 : vector<2x1xf32> to vector<2x32xf32>
      %175 = arith.mulf %170, %174 : vector<2x32xf32>
      %176 = vector.broadcast %156 : vector<1x32xf32> to vector<2x32xf32>
      %177 = arith.mulf %175, %176 : vector<2x32xf32>
      %178 = vector.broadcast %157 : vector<1x32xf32> to vector<2x32xf32>
      %179 = arith.addf %177, %178 : vector<2x32xf32>
      %c0_80 = arith.constant 0 : index
      %c0_81 = arith.constant 0 : index
      %180 = vector.load %arg19[%c0_80, %c0_81] : memref<32x16xf32, #tpu.memory_space<vmem>>, vector<32x16xf32>
      %cst_82 = arith.constant dense<0.000000e+00> : vector<2x16xf32>
      %181 = tpu.matmul %179, %180, %cst_82 {dimension_numbers = #tpu.dot_dimension_numbers<[1], [0], [0], [1], [0, 0, 1, 1], [], []>} : vector<2x32xf32>, vector<32x16xf32>, vector<2x16xf32> -> vector<2x16xf32>
      %182 = vector.shape_cast %181 : vector<2x16xf32> to vector<2x1x16xf32>
      %c0_83 = arith.constant 0 : index
      %c0_84 = arith.constant 0 : index
      %c0_85 = arith.constant 0 : index
      %183 = vector.load %arg20[%c0_83, %c0_84, %c0_85] : memref<2x1x16xf32, #tpu.memory_space<vmem>>, vector<2x1x16xf32>
      tpu.vector_store %arg20[%c0_83, %c0_84, %c0_85], %182 {strides = array<i32>} : memref<2x1x16xf32, #tpu.memory_space<vmem>>, vector<2x1x16xf32>,
    } else {
    }
    return
  }
  func.func @transform_0(%arg0: i32, %arg1: i32, %arg2: memref<2xi32, #tpu.memory_space<smem>>) -> (i32, i32, i32) {
    %c0_i32 = arith.constant 0 : i32
    %c0_i32_0 = arith.constant 0 : i32
    %c0_i32_1 = arith.constant 0 : i32
    return %arg0, %c0_i32, %c0_i32_0 : i32, i32, i32
  }
  func.func @transform_1(%arg0: i32, %arg1: i32, %arg2: memref<2xi32, #tpu.memory_space<smem>>) -> (i32, i32) {
    %c0_i32 = arith.constant 0 : i32
    %c0_i32_0 = arith.constant 0 : i32
    %c0_i32_1 = arith.constant 0 : i32
    return %c0_i32, %c0_i32_0 : i32, i32
  }
  func.func @transform_2(%arg0: i32, %arg1: i32, %arg2: memref<2xi32, #tpu.memory_space<smem>>) -> (i32, i32, i32) {
    %c0_i32 = arith.constant 0 : i32
    %c0_i32_0 = arith.constant 0 : i32
    %c0_i32_1 = arith.constant 0 : i32
    return %arg1, %c0_i32, %c0_i32_0 : i32, i32, i32
  }
  func.func @transform_3(%arg0: i32, %arg1: i32, %arg2: memref<2xi32, #tpu.memory_space<smem>>) -> (i32, i32, i32) {
    %c0_i32 = arith.constant 0 : i32
    %c0_i32_0 = arith.constant 0 : i32
    %c0_i32_1 = arith.constant 0 : i32
    return %arg1, %c0_i32, %c0_i32_0 : i32, i32, i32
  }
  func.func @transform_4(%arg0: i32, %arg1: i32, %arg2: memref<2xi32, #tpu.memory_space<smem>>) -> (i32, i32, i32) {
    %c0_i32 = arith.constant 0 : i32
    %c0_i32_0 = arith.constant 0 : i32
    %c0_i32_1 = arith.constant 0 : i32
    return %arg1, %c0_i32, %c0_i32_0 : i32, i32, i32
  }
  func.func @transform_5(%arg0: i32, %arg1: i32, %arg2: memref<2xi32, #tpu.memory_space<smem>>) -> (i32, i32, i32) {
    %c0_i32 = arith.constant 0 : i32
    %c0_i32_0 = arith.constant 0 : i32
    %c0_i32_1 = arith.constant 0 : i32
    return %arg1, %c0_i32, %c0_i32_0 : i32, i32, i32
  }
  func.func @transform_6(%arg0: i32, %arg1: i32, %arg2: memref<2xi32, #tpu.memory_space<smem>>) -> (i32, i32, i32) {
    %c0_i32 = arith.constant 0 : i32
    %c0_i32_0 = arith.constant 0 : i32
    %c0_i32_1 = arith.constant 0 : i32
    return %arg1, %c0_i32, %c0_i32_0 : i32, i32, i32
  }
  func.func @transform_7(%arg0: i32, %arg1: i32, %arg2: memref<2xi32, #tpu.memory_space<smem>>) -> (i32, i32, i32) {
    %c0_i32 = arith.constant 0 : i32
    %c0_i32_0 = arith.constant 0 : i32
    %c0_i32_1 = arith.constant 0 : i32
    return %arg1, %c0_i32, %c0_i32_0 : i32, i32, i32
  }
  func.func @transform_8(%arg0: i32, %arg1: i32, %arg2: memref<2xi32, #tpu.memory_space<smem>>) -> (i32, i32, i32) {
    %c0_i32 = arith.constant 0 : i32
    %c0_i32_0 = arith.constant 0 : i32
    %c0_i32_1 = arith.constant 0 : i32
    return %arg1, %c0_i32, %c0_i32_0 : i32, i32, i32
  }
  func.func @transform_9(%arg0: i32, %arg1: i32, %arg2: memref<2xi32, #tpu.memory_space<smem>>) -> (i32, i32, i32) {
    %c0_i32 = arith.constant 0 : i32
    %c0_i32_0 = arith.constant 0 : i32
    %c0_i32_1 = arith.constant 0 : i32
    return %arg1, %c0_i32, %c0_i32_0 : i32, i32, i32
  }
  func.func @transform_10(%arg0: i32, %arg1: i32, %arg2: memref<2xi32, #tpu.memory_space<smem>>) -> (i32, i32, i32) {
    %c0_i32 = arith.constant 0 : i32
    %c0_i32_0 = arith.constant 0 : i32
    %c0_i32_1 = arith.constant 0 : i32
    return %arg1, %c0_i32, %c0_i32_0 : i32, i32, i32
  }
  func.func @transform_11(%arg0: i32, %arg1: i32, %arg2: memref<2xi32, #tpu.memory_space<smem>>) -> (i32, i32, i32) {
    %c0_i32 = arith.constant 0 : i32
    %c0_i32_0 = arith.constant 0 : i32
    %c0_i32_1 = arith.constant 0 : i32
    return %arg1, %c0_i32, %c0_i32_0 : i32, i32, i32
  }
  func.func @transform_12(%arg0: i32, %arg1: i32, %arg2: memref<2xi32, #tpu.memory_space<smem>>) -> (i32, i32, i32) {
    %c0_i32 = arith.constant 0 : i32
    %c0_i32_0 = arith.constant 0 : i32
    %c0_i32_1 = arith.constant 0 : i32
    return %arg1, %c0_i32, %c0_i32_0 : i32, i32, i32
  }
  func.func @transform_13(%arg0: i32, %arg1: i32, %arg2: memref<2xi32, #tpu.memory_space<smem>>) -> (i32, i32, i32) {
    %c0_i32 = arith.constant 0 : i32
    %c0_i32_0 = arith.constant 0 : i32
    %c0_i32_1 = arith.constant 0 : i32
    return %arg1, %c0_i32, %c0_i32_0 : i32, i32, i32
  }
  func.func @transform_14(%arg0: i32, %arg1: i32, %arg2: memref<2xi32, #tpu.memory_space<smem>>) -> (i32, i32) {
    %c0_i32 = arith.constant 0 : i32
    %c0_i32_0 = arith.constant 0 : i32
    %c0_i32_1 = arith.constant 0 : i32
    return %c0_i32, %c0_i32_0 : i32, i32
  }
  func.func @transform_15(%arg0: i32, %arg1: i32, %arg2: memref<2xi32, #tpu.memory_space<smem>>) -> (i32, i32) {
    %c0_i32 = arith.constant 0 : i32
    %c0_i32_0 = arith.constant 0 : i32
    %c0_i32_1 = arith.constant 0 : i32
    return %c0_i32, %c0_i32_0 : i32, i32
  }
  func.func @transform_16(%arg0: i32, %arg1: i32, %arg2: memref<2xi32, #tpu.memory_space<smem>>) -> (i32, i32) {
    %c0_i32 = arith.constant 0 : i32
    %c0_i32_0 = arith.constant 0 : i32
    %c0_i32_1 = arith.constant 0 : i32
    return %c0_i32, %c0_i32_0 : i32, i32
  }
  func.func @transform_17(%arg0: i32, %arg1: i32, %arg2: memref<2xi32, #tpu.memory_space<smem>>) -> (i32, i32, i32) {
    %c0_i32 = arith.constant 0 : i32
    %c0_i32_0 = arith.constant 0 : i32
    %c0_i32_1 = arith.constant 0 : i32
    return %arg0, %c0_i32, %c0_i32_0 : i32, i32, i32
  }
}

</mosaic_0001>

<bundles_post_ra>
// kernel: tpu_custom_call.1
= control target key start
LH: loop header
LB: loop body
LE: loop exit
PB: predicated region body
PF: predicated region fallthrough
CT: control target
= control target key end

     0   :  { %s4866_s0 = inlined_call_operand.vmem [shape: s32[2], index: 0, kind: input, shape index: {}]   ;;  %s4867_s1 = inlined_call_operand.vmem [shape: f32[2,8,32], index: 1, kind: input, shape index: {}]   ;;  %s4868_s2 = inlined_call_operand.vmem [shape: f32[8,32], index: 2, kind: input, shape index: {}]   ;;  %s4869_s3 = inlined_call_operand.vmem [shape: f32[2,1,32], index: 3, kind: input, shape index: {}]   ;;  %s4870_s4 = inlined_call_operand.vmem [shape: f32[2,1,32], index: 4, kind: input, shape index: {}]   ;;  %s4871_s5 = inlined_call_operand.vmem [shape: bf16[2,32,96], index: 5, kind: input, shape index: {}]   ;;  %s4872_s6 = inlined_call_operand.vmem [shape: f32[2,1,96], index: 6, kind: input, shape index: {}]   ;;  %s4873_s7 = inlined_call_operand.vmem [shape: bf16[2,32,32], index: 7, kind: input, shape index: {}]   ;;  %s4874_s8 = inlined_call_operand.vmem [shape: f32[2,1,32], index: 8, kind: input, shape index: {}]   ;;  %s4875_s9 = inlined_call_operand.vmem [shape: f32[2,1,32], index: 9, kind: input, shape index: {}]   ;;  %s4876_s10 = inlined_call_operand.vmem [shape: f32[2,1,32], index: 10, kind: input, shape index: {}]   ;;  %s4877_s11 = inlined_call_operand.vmem [shape: bf16[2,32,128], index: 11, kind: input, shape index: {}]   ;;  %s4878_s12 = inlined_call_operand.vmem [shape: f32[2,1,128], index: 12, kind: input, shape index: {}]   ;;  %s4879_s13 = inlined_call_operand.vmem [shape: bf16[2,128,32], index: 13, kind: input, shape index: {}]   ;;  %s4880_s14 = inlined_call_operand.vmem [shape: f32[2,1,32], index: 14, kind: input, shape index: {}]   ;;  %s4881_s15 = inlined_call_operand.vmem [shape: f32[1,32], index: 15, kind: input, shape index: {}]   ;;  %s4882_s16 = inlined_call_operand.vmem [shape: f32[1,32], index: 16, kind: input, shape index: {}]   ;;  %s4883_s17 = inlined_call_operand.vmem [shape: f32[32,16], index: 17, kind: input, shape index: {}]   ;;  %s4884_s18 = inlined_call_operand.hbm [shape: f32[2,1,16], index: 18, kind: output, shape index: {}]  }
   0x1   :  { %4890 = sst [smem:[#allocation13_spill]] %s4866_s0 }
   0x2   :  { %4891 = sst [smem:[#allocation14_spill]] %s4867_s1  ;;  %s4900_s29 = sld [smem:[#allocation13_spill]] }
   0x3   :  { %4892 = sst [smem:[#allocation15_spill]] %s4868_s2 }
   0x4   :  { %4893 = sst [smem:[#allocation16_spill]] %s4871_s5 }
   0x5   :  { %4894 = sst [smem:[#allocation17_spill]] %s4873_s7 }
   0x6   :  { %4895 = sst [smem:[#allocation18_spill]] %s4878_s12 }
   0x7   :  { %4896 = sst [smem:[#allocation19_spill]] %s4881_s15 }
   0x8   :  { %4897 = sst [smem:[#allocation20_spill]] %s4882_s16  ;;  %s23_s12 = sshll.u32 %s4900_s29, 4  ;;  %s24_s12 = int_to_ptr.vmem [resolvable:$true] %s23_s12 }
   0x9   :  { %4898 = sst [smem:[#allocation21_spill]] %s4883_s17  ;;  %s4044_s30 = scalar_lea.vmem %s24_s12, 16 }
   0xa   :  { %4899 = sst [smem:[#allocation22_spill]] %s4884_s18  ;;  %p4045_p0 = scmp.ne.s32.totalorder %s24_s12, %s4044_s30 }
   0xb   :  { %p4049_p1 = scmp.lt.s32.totalorder %s24_s12, %s24_s12  ;;  %p4050_p2 = scmp.lt.s32.totalorder %s4044_s30, %s4044_s30 }
   0xd   :  { %p4051_p3 = por %p4050_p2, %p4049_p1 }
   0xf   :  { %p4052_p4 = pnand %p4051_p3, %p4045_p0 }
  0x11   :  { %4055 = shalt.err (!%p4052_p4)  }
  0x12   :  { %s4112_s0 = smov [#allocation5]  }
  0x13   :  { %26 = dma.vmem_to_smem %s24_s12, 16, %s4112_s0, [#allocation4] }
  0x14   :  { %4094 = dma.done.wait [#allocation4], 16 }
  0x15   :  { %4095 = vsyncadd [#allocation4], 4294967280 }
  0x16   :  { %28 = sfence }
  0x17   :  { %29 = vsyncpa [#allocation7], 0  ;;  %s4230_s19 = smov 0   ;;  %s4232_s1 = smov 0  }
  0x18   :  { %s4234_s20 = smov 0  }
  0x19 LB: > { %4901 = sst [smem:[#allocation10_spill]] %s4106_s1  ;;  %s44_s21 = sadd.s32 1, %s4106_s1  ;;  %s4110_s20 = sphi %s4234_s20, %s35_s20   ;;  %s4106_s1 = sphi %s4232_s1, %s4923_s1   ;;  %s4102_s19 = sphi %s4230_s19, %s4922_s19  }
  0x1a   : > { %4902 = sst [smem:[#allocation11_spill]] %s4110_s20  ;;  %p45_p5 = scmp.ge.s32.totalorder %s44_s21, 2 }
  0x1b   : > { %p3618_p6 = scmp.ge.s32.totalorder %s4110_s20, 1  ;;  %p612_p7 = scmp.lt.s32.totalorder %s4110_s20, 3 }
  0x1c   : > { %s4925_s21 = smov (%p45_p5, %s44_s21), 0 }
  0x1d   : > { %4903 = sst [smem:[#allocation12_spill]] %s4925_s21  ;;  %p613_p8 = pnand %p3618_p6, %p612_p7 }
  0x1e   : > { %p709_p9 = scmp.lt.s32.totalorder (!%p613_p8), %s4102_s19, 1  ;;  %s4904_s5 = sld [smem:[#allocation16_spill]] (!%p613_p8) }
  0x1f   : > { %616 = sbr.rel (%p613_p8) target bundleno = 3407 (0xd4f), region = 88  ;;  %s4905_s7 = sld [smem:[#allocation17_spill]] (!%p613_p8) }
  0x20   : > { %p3627_p10 = scmp.ne.s32.totalorder (!%p613_p8), %s4102_s19, 0 }
  0x26   : > { %s4253_s22 = scalar_select %p709_p9, %s4102_s19, 1 }
  0x27   : > { %s4907_s2 = sld [smem:[#allocation14_spill]] (!%p3627_p10)  ;;  %vm764_vm0 = vcmask (!%p3627_p10), 261120   ;;  %v767_v3 = vlaneseq (!%p3627_p10)  ;;  %vm775_vm3 = vcmask (!%p3627_p10), 64512   ;;  %v4113_v8 = vmov (!%p3627_p10), -1e+30  }
  0x28   : > { %s3697_s28 = sshll.u32 %s4253_s22, 4  ;;  %s733_s16 = scalar_lea.vmem %s4875_s9, %s4253_s22 }
  0x29   : > { %s4271_s12 = scalar_lea.vmem %s4904_s5, %s3697_s28  ;;  %s4276_s18 = scalar_lea.vmem %s4905_s7, %s3697_s28  ;;  %v768_v6 = vshrl.u32 (!%p3627_p10), %v767_v3, 7  ;;  %v770_v7 = vand.u32 (!%p3627_p10), 127, %v767_v3 }
  0x2a   : > { %s736_s0 = scalar_lea.vmem %s4876_s10, %s4253_s22  ;;  %s4293_s5 = scalar_lea.vmem %s4877_s11, %s3697_s28 }
  0x2b   : > { %s4906_s7 = sld [smem:[#allocation18_spill]]  ;;  %s3700_s17 = sshll.u32 %s4253_s22, 6  ;;  %vm771_vm1 = vcmp.ge.s32.totalorder (!%p3627_p10), %v768_v6, %v770_v7  ;;  %vm772_vm2 = vcmp.lt.s32.totalorder (!%p3627_p10), %v770_v7, 8 }
  0x2c   : > { %s4303_s25 = scalar_lea.vmem %s4879_s13, %s3700_s17  ;;  %s752_s29 = scalar_lea.vmem %s4880_s14, %s4253_s22  ;;  %vm773_vm4 = vmand (!%p3627_p10), %vm771_vm1, %vm772_vm2 }
  0x2d   : > { %758 = sbr.rel (%p3627_p10) target bundleno = 59 (0x3b), region = 92  ;;  %v759_v0 = vld [vmem:[%s4907_s2] sm:$0xff] (!%p3627_p10)  ;;  %v760_v2 = vld [vmem:[%s4907_s2 + $0x8] sm:$0xff] (!%p3627_p10)  ;;  %v774_v9 = vsel (!%p3627_p10), %vm773_vm4, 0.0, %v4113_v8 }
  0x2e   : > { %776 = vst.msk [vmem:[#allocation3] sm:$0xff] (!%p3627_p10), %vm775_vm3, %v774_v9 }
  0x31   : > { %s744_s15 = scalar_lea.vmem %s4906_s7, %s4253_s22  ;;  %s4908_s7 = sld [smem:[#allocation15_spill]] (!%p3627_p10) }
  0x37   : > { %v761_v1 = vld [vmem:[%s4908_s7] sm:$0xff] }
  0x38   : > { %v762_v4 = vadd.f32 %v761_v1, %v759_v0  ;;  %v763_v5 = vadd.f32 %v761_v1, %v760_v2 }
  0x3a   : > { %765 = vst.msk [vmem:[#allocation2] sm:$0xff] %vm764_vm0, %v762_v4  ;;  %766 = vst.msk [vmem:[#allocation2 + $0x8] sm:$0xff] %vm764_vm0, %v763_v5 }
  0x3b PF: > { %vm781_vm5 = vcmask 261120   ;;  %v3978_v24 = vld [vmem:[%s4271_s12] sm:$0xff]   ;;  %v4114_v25 = vmov 0.0   ;;  %v3979_v26 = vld [vmem:[%s4271_s12 + $0x8] sm:$0xff]   ;;  %vm4115_vm6 = vmmov 0   ;;  %s4909_s24 = scalar_lea.vmem %s4869_s3, %s4253_s22  ;;  %s4910_s30 = scalar_lea.vmem %s4870_s4, %s4253_s22  ;;  %v918_v59 = vlaneseq }
  0x3c   : > { %3756 = vmatprep.subr.bf16.mxu0 %v4114_v25  ;;  %3776 = vmatprep.subr.bf16.mxu1 %v4114_v25  ;;  %v3628_v35 = vld [vmem:[%s4909_s24] ss:$0 sm:$0xff]  ;;  %s4911_s1 = scalar_lea.vmem %s4872_s6, %s4253_s22  ;;  %s4116_s7 = smov 112   ;;  %v4121_v57 = vmov 1983009808   ;;  %vm1801_vm7 = vcmask 64512  }
  0x3d   : > { %3757 = vmatpush3.bf16.msra.mxu0 %v3978_v24  ;;  %3760 = vmatprep.mubr.msk.bf16.mxu0 %vm4115_vm6, %v4114_v25  ;;  %v3629_v39 = vld [vmem:[%s4910_s30] ss:$0 sm:$0xff]  ;;  %s4117_s21 = smov 120   ;;  %s4118_s20 = smov 104   ;;  %v916_v58 = vunpack.c.l.s4 %v4121_v57  ;;  %v4374_v61 = vshrl.u32 %v918_v59, 7  ;;  %vm2286_vm8 = vcmask 1043456  }
  0x3e   : > { %3758 = vmatprep.subr.bf16.mxu0 %v4114_v25  ;;  %3778 = vmatprep.mubr.msk.bf16.mxu1 %vm4115_vm6, %v4114_v25  ;;  %v3630_v44 = vld [vmem:[%s4911_s1] ss:$0 sm:$0xff]  ;;  %s4119_s17 = smov 96   ;;  %s4120_s12 = smov 64   ;;  %v4122_v62 = vmov 1934713408  }
  0x3f   : > { %v917_v60 = vunpack.c.0.s8 %v916_v58  ;;  %v948_v63 = vunpack.c.l.s4 %v4122_v62  ;;  %s4123_s24 = smov 16   ;;  %s4124_s27 = smov 8   ;;  %vm2950_vm9 = vcmask 130048   ;;  %vm2953_vm10 = vcmask 195584  }
  0x40   : > { %s4125_s26 = smov 24   ;;  %s4912_s28 = scalar_lea.vmem %s4874_s8, %s4253_s22 }
  0x41   : > { %v777_v10 = vld [vmem:[#allocation2] sm:$0xff]  ;;  %v778_v11 = vld [vmem:[#allocation2 + $0x8] sm:$0xff]  ;;  %3759 = vmatpush3.bf16.msra.mxu0 %v3979_v26  ;;  %v4379_v2 = vsub.s32 %v917_v60, %v4374_v61  ;;  %v949_v5 = vunpack.c.0.s8 %v948_v63  ;;  %p3687_p11 = scmp.ne.s32.totalorder %s4102_s19, 1 }
  0x42   : > { %v782_v12 = vsel %vm781_vm5, %v777_v10, 0.0  ;;  %v785_v13 = vsel %vm781_vm5, %v778_v11, 0.0  ;;  %3764 = vmatprep.subr.bf16.mxu0 %v4114_v25  ;;  %s3688_s22 = sld [smem:[#allocation5 + $0x1]] (!%p3687_p11)  ;;  %vm3289_vm11 = vcmask (!%p3687_p11), 1040384   ;;  %vm3293_vm12 = vcmask (!%p3687_p11), 254976  }
  0x43   : > { %783 = vadd.xlane.f32.xlu0 %v782_v12  ;;  %vm4127_vm13 = vmmov (!%p3687_p11), 0   ;;  %vm3423_vm14 = vcmask (!%p3687_p11), 122880  }
  0x47   : > { %786 = vadd.xlane.f32.xlu0 %v785_v13 }
  0xd0   : > { %v784_v14 = vpop.xlane.xlu0 %783 }
  0xd1   : > { %v789_v15 = vmul.f32 0.03125, %v784_v14 }
  0xd3   : > { %v791_v16 = vsub.f32 %v777_v10, %v789_v15  ;;  %v4388_v10 = vsub.s32 %v949_v5, %v4374_v61 }
  0xd4   : > { %v787_v17 = vpop.xlane.xlu0 %786 }
  0xd5   : > { %v790_v18 = vmul.f32 0.03125, %v787_v17  ;;  %v793_v19 = vmul.f32 %v791_v16, %v791_v16 }
  0xd7   : > { %v792_v20 = vsub.f32 %v778_v11, %v790_v18  ;;  %v795_v21 = vsel %vm781_vm5, %v793_v19, 0.0 }
  0xd8   : > { %796 = vadd.xlane.f32.xlu1 %v795_v21 }
  0xd9   : > { %v794_v22 = vmul.f32 %v792_v20, %v792_v20 }
  0xdb   : > { %v798_v23 = vsel %vm781_vm5, %v794_v22, 0.0 }
  0xdc   : > { %799 = vadd.xlane.f32.xlu1 %v798_v23 }
 0x165   : > { %v797_v27 = vpop.xlane.xlu1 %796 }
 0x166   : > { %v801_v28 = vmul.f32 0.03125, %v797_v27 }
 0x168   : > { %v803_v29 = vadd.f32 1e-05, %v801_v28 }
 0x169   : > { %v800_v30 = vpop.xlane.xlu1 %799 }
 0x16a   : > { %3992 = vrsqrt.f32 %v803_v29  ;;  %v802_v31 = vmul.f32 0.03125, %v800_v30 }
 0x16c   : > { %v804_v32 = vadd.f32 1e-05, %v802_v31 }
 0x16e   : > { %3994 = vrsqrt.f32 %v804_v32 }
 0x174   : > { %v3993_v33 = vpop.eup %3992 }
 0x175   : > { %v807_v34 = vmul.f32 %v3993_v33, %v791_v16 }
 0x177   : > { %v815_v38 = vmul.f32 %v3628_v35, %v807_v34 }
 0x178   : > { %v3995_v36 = vpop.eup %3994 }
 0x179   : > { %v808_v37 = vmul.f32 %v3995_v36, %v792_v20  ;;  %v823_v41 = vadd.f32 %v3629_v39, %v815_v38 }
 0x17b   : > { %v816_v40 = vmul.f32 %v3628_v35, %v808_v37 }
 0x17d   : > { %v824_v42 = vadd.f32 %v3629_v39, %v816_v40 }
 0x17f   : > { %v829_v43 = vpack.c.bf16 %v824_v42, %v823_v41 }
 0x181   : > { %3761 = vmatmul.mubr.msk.bf16.vlgmr.msra.gmra.mrb[0].mxu0 %vm781_vm5, %v829_v43 }
 0x182   : > { %3766 = vmatprep.mubr.msk.bf16.mxu0 %vm4115_vm6, %v4114_v25 }
 0x254   : > { %v886_v45 = vpop.f32.mrb[0].mxu0 }
 0x255   : > { %v887_v46 = vadd.f32 %v3630_v44, %v886_v45  ;;  %v3762_v47 = vpop.f32.mrb[1].mxu0 }
 0x256   : > { %v889_v48 = vpop.f32.mrb[2].mxu0 }
 0x257   : > { %901 = vrot.lane.b32.xlu1 %v887_v46, %s4116_s7  ;;  %895 = vrot.lane.b32.xlu0 %v887_v46, %s4117_s21  ;;  %v3763_v49 = vpop.f32.mrb[3].mxu0  ;;  %v4351_v50 = vadd.f32 %v3630_v44, %v889_v48 }
 0x25b   : > { %907 = vrot.lane.b32.xlu1 %v887_v46, %s4118_s20  ;;  %903 = vrot.lane.b32.xlu0 %v4351_v50, %s4116_s7 }
 0x25f   : > { %1193 = vrot.lane.b32.xlu0 %v887_v46, %s4119_s17  ;;  %897 = vrot.lane.b32.xlu1 %v4351_v50, %s4117_s21 }
 0x263   : > { %909 = vrot.lane.b32.xlu1 %v4351_v50, %s4118_s20  ;;  %s3278_s20 = sld [smem:[#allocation5]] (!%p3687_p11) }
 0x2c9   : > { %v4356_v51 = vpop.permute.xlu1 %901  ;;  %v896_v52 = vpop.permute.xlu0 %895 }
 0x2ca   : > { %1201 = vrot.lane.b32.xlu0 %v4356_v51, %s4119_s17  ;;  %1197 = vrot.lane.b32.xlu1 %v896_v52, %s4119_s17  ;;  %v913_v3 = vcombine.low %v887_v46, %v4356_v51  ;;  %v914_v4 = vcombine.high %v887_v46, %v4356_v51 }
 0x2cc   : > { %v921_v8 = vrot.slane %v913_v3, %v4379_v2  ;;  %v928_v9 = vrot.slane %v914_v4, %v4379_v2 }
 0x2cd   : > { %v4359_v53 = vpop.permute.xlu1 %907  ;;  %v4363_v54 = vpop.permute.xlu0 %903 }
 0x2ce   : > { %1195 = vrot.lane.b32.xlu0 %v4351_v50, %s4119_s17  ;;  %1205 = vrot.lane.b32.xlu1 %v4359_v53, %s4119_s17  ;;  %v929_v0 = vcombine.low %v896_v52, %v4359_v53  ;;  %v930_v1 = vcombine.high %v896_v52, %v4359_v53  ;;  %v981_v22 = vcombine.low %v4351_v50, %v4363_v54 }
 0x2cf   : > { %v982_v30 = vcombine.high %v4351_v50, %v4363_v54 }
 0x2d0   : > { %v937_v6 = vrot.slane %v929_v0, %v4379_v2  ;;  %v944_v7 = vrot.slane %v930_v1, %v4379_v2  ;;  %v989_v33 = vrot.slane %v981_v22, %v4379_v2 }
 0x2d1   : > { %v898_v55 = vpop.permute.xlu1 %897  ;;  %v1194_v19 = vpop.permute.xlu0 %1193  ;;  %v996_v41 = vrot.slane %v982_v30, %v4379_v2 }
 0x2d2   : > { %1203 = vrot.lane.b32.xlu0 %v4363_v54, %s4119_s17  ;;  %1199 = vrot.lane.b32.xlu1 %v898_v55, %s4119_s17  ;;  %v945_v11 = vcombine.low %v921_v8, %v937_v6  ;;  %v946_v12 = vcombine.high %v921_v8, %v937_v6  ;;  %v961_v13 = vcombine.low %v928_v9, %v944_v7 }
 0x2d3   : > { %v962_v14 = vcombine.high %v928_v9, %v944_v7 }
 0x2d4   : > { %v953_v15 = vrot.slane %v945_v11, %v4388_v10  ;;  %v960_v16 = vrot.slane %v946_v12, %v4388_v10  ;;  %v969_v17 = vrot.slane %v961_v13, %v4388_v10 }
 0x2d5   : > { %v4366_v56 = vpop.permute.xlu1 %909  ;;  %v976_v18 = vrot.slane %v962_v14, %v4388_v10 }
 0x2d6   : > { %1497 = vrot.lane.b32.xlu0 %v887_v46, %s4120_s12  ;;  %1207 = vrot.lane.b32.xlu1 %v4366_v56, %s4119_s17  ;;  %v997_v20 = vcombine.low %v898_v55, %v4366_v56  ;;  %v1049_v21 = vcombine.low %v953_v15, %v960_v16  ;;  %v3634_v23 = vcombine.high %v953_v15, %v960_v16  ;;  %s3509_s17 = scalar_lea.vmem (!%p3687_p11), [#allocation2], %s3688_s22 }
 0x2d7   : > { %v1065_v24 = vcombine.low %v969_v17, %v976_v18  ;;  %v3635_v26 = vcombine.high %v969_v17, %v976_v18  ;;  %v998_v27 = vcombine.high %v898_v55, %v4366_v56 }
 0x2d8   : > { %v1005_v31 = vrot.slane %v997_v20, %v4379_v2  ;;  %v4402_v32 = vrot.slane %v1049_v21, %v4379_v2  ;;  %v4406_v34 = vrot.slane %v3634_v23, %v4379_v2 }
 0x2d9   : > { %v4409_v35 = vrot.slane %v1065_v24, %v4379_v2  ;;  %v4412_v36 = vrot.slane %v3635_v26, %v4379_v2  ;;  %v1012_v37 = vrot.slane %v998_v27, %v4379_v2 }
 0x2da   : > { %1499 = vrot.lane.b32.xlu1 %v4351_v50, %s4120_s12  ;;  %v1013_v42 = vcombine.low %v989_v33, %v1005_v31  ;;  %v1014_v43 = vcombine.high %v989_v33, %v1005_v31  ;;  %v1081_v49 = vcombine.low %v4402_v32, %v4406_v34 }
 0x2db   : > { %v1029_v47 = vcombine.low %v996_v41, %v1012_v37  ;;  %v1030_v48 = vcombine.high %v996_v41, %v1012_v37  ;;  %v1097_v50 = vcombine.low %v4409_v35, %v4412_v36 }
 0x2dc   : > { %v1021_v59 = vrot.slane %v1013_v42, %v4388_v10  ;;  %v1028_v60 = vrot.slane %v1014_v43, %v4388_v10  ;;  %v4429_v7 = vrot.slane %v1081_v49, %v4388_v10 }
 0x2dd   : > { %v1037_v5 = vrot.slane %v1029_v47, %v4388_v10  ;;  %v1044_v6 = vrot.slane %v1030_v48, %v4388_v10  ;;  %v4432_v8 = vrot.slane %v1097_v50, %v4388_v10 }
 0x2de   : > { %1501 = vrot.lane.b32.xlu1 %v896_v52, %s4120_s12  ;;  %v1117_v14 = vcombine.low %v1021_v59, %v1028_v60  ;;  %v3636_v15 = vcombine.high %v1021_v59, %v1028_v60 }
 0x2df   : > { %v1133_v23 = vcombine.low %v1037_v5, %v1044_v6  ;;  %v3637_v24 = vcombine.high %v1037_v5, %v1044_v6 }
 0x2e0   : > { %v4447_v48 = vrot.slane %v1117_v14, %v4379_v2  ;;  %v4450_v49 = vrot.slane %v3636_v15, %v4379_v2 }
 0x2e1   : > { %v4461_v6 = vrot.slane %v1133_v23, %v4379_v2  ;;  %v1113_v23 = vcombine.low %v4429_v7, %v4432_v8 }
 0x2e2   : > { %1503 = vrot.lane.b32.xlu1 %v898_v55, %s4120_s12 }
 0x33c   : > { %v1202_v28 = vpop.permute.xlu0 %1201  ;;  %v1198_v29 = vpop.permute.xlu1 %1197 }
 0x33d   : > { %v1217_v38 = vcombine.low %v1194_v19, %v1202_v28  ;;  %v1218_v39 = vcombine.high %v1194_v19, %v1202_v28 }
 0x33f   : > { %v1225_v52 = vrot.slane %v1217_v38, %v4379_v2  ;;  %v1232_v55 = vrot.slane %v1218_v39, %v4379_v2 }
 0x340   : > { %v1196_v40 = vpop.permute.xlu0 %1195  ;;  %v1206_v44 = vpop.permute.xlu1 %1205 }
 0x341   : > { %v1233_v45 = vcombine.low %v1198_v29, %v1206_v44  ;;  %v1234_v46 = vcombine.high %v1198_v29, %v1206_v44 }
 0x343   : > { %v1241_v57 = vrot.slane %v1233_v45, %v4379_v2  ;;  %v1248_v58 = vrot.slane %v1234_v46, %v4379_v2 }
 0x344   : > { %v1200_v62 = vpop.permute.xlu1 %1199  ;;  %v1204_v4 = vpop.permute.xlu0 %1203 }
 0x345   : > { %v1249_v63 = vcombine.low %v1225_v52, %v1241_v57  ;;  %v1250_v0 = vcombine.high %v1225_v52, %v1241_v57  ;;  %v1265_v1 = vcombine.low %v1232_v55, %v1248_v58  ;;  %v1266_v3 = vcombine.high %v1232_v55, %v1248_v58 }
 0x346   : > { %v1285_v16 = vcombine.low %v1196_v40, %v1204_v4  ;;  %v1286_v17 = vcombine.high %v1196_v40, %v1204_v4 }
 0x347   : > { %v1257_v9 = vrot.slane %v1249_v63, %v4388_v10  ;;  %v1264_v11 = vrot.slane %v1250_v0, %v4388_v10  ;;  %v1273_v12 = vrot.slane %v1265_v1, %v4388_v10  ;;  %v1280_v13 = vrot.slane %v1266_v3, %v4388_v10 }
 0x348   : > { %v1208_v18 = vpop.permute.xlu1 %1207  ;;  %v1293_v33 = vrot.slane %v1285_v16, %v4379_v2  ;;  %v1300_v37 = vrot.slane %v1286_v17, %v4379_v2 }
 0x349   : > { %v1353_v19 = vcombine.low %v1257_v9, %v1264_v11  ;;  %v3638_v20 = vcombine.high %v1257_v9, %v1264_v11  ;;  %v1369_v21 = vcombine.low %v1273_v12, %v1280_v13  ;;  %v3639_v22 = vcombine.high %v1273_v12, %v1280_v13 }
 0x34a   : > { %v1301_v26 = vcombine.low %v1200_v62, %v1208_v18  ;;  %v1302_v27 = vcombine.high %v1200_v62, %v1208_v18  ;;  %v4464_v9 = vrot.slane %v3637_v24, %v4379_v2  ;;  %v1114_v24 = vcombine.high %v4429_v7, %v4432_v8 }
 0x34b   : > { %v1360_v28 = vrot.slane %v1353_v19, %v4379_v2  ;;  %v1368_v29 = vrot.slane %v3638_v20, %v4379_v2  ;;  %v1376_v30 = vrot.slane %v1369_v21, %v4379_v2  ;;  %v1384_v31 = vrot.slane %v3639_v22, %v4379_v2 }
 0x34c   : > { %v1309_v38 = vrot.slane %v1301_v26, %v4379_v2  ;;  %v1316_v39 = vrot.slane %v1302_v27, %v4379_v2  ;;  %v1082_v22 = vcombine.high %v4402_v32, %v4406_v34  ;;  %v1098_v26 = vcombine.high %v4409_v35, %v4412_v36 }
 0x34d   : > { %v1385_v40 = vcombine.low %v1360_v28, %v1368_v29  ;;  %v1401_v41 = vcombine.low %v1376_v30, %v1384_v31  ;;  %v1386_v42 = vcombine.high %v1360_v28, %v1368_v29  ;;  %v1402_v43 = vcombine.high %v1376_v30, %v1384_v31 }
 0x34e   : > { %v1317_v44 = vcombine.low %v1293_v33, %v1309_v38  ;;  %v1318_v45 = vcombine.high %v1293_v33, %v1309_v38  ;;  %v1333_v46 = vcombine.low %v1300_v37, %v1316_v39  ;;  %v1334_v47 = vcombine.high %v1300_v37, %v1316_v39 }
 0x34f   : > { %v1393_v50 = vrot.slane %v1385_v40, %v4388_v10  ;;  %v1409_v52 = vrot.slane %v1401_v41, %v4388_v10  ;;  %v1400_v63 = vrot.slane %v1386_v42, %v4388_v10  ;;  %v1416_v0 = vrot.slane %v1402_v43, %v4388_v10 }
 0x350   : > { %v1325_v55 = vrot.slane %v1317_v44, %v4388_v10  ;;  %v1332_v57 = vrot.slane %v1318_v45, %v4388_v10  ;;  %v1341_v58 = vrot.slane %v1333_v46, %v4388_v10  ;;  %v1348_v59 = vrot.slane %v1334_v47, %v4388_v10 }
 0x351   : > { %v1417_v60 = vcombine.low %v1393_v50, %v1409_v52  ;;  %v1418_v62 = vcombine.high %v1393_v50, %v1409_v52  ;;  %v1419_v19 = vcombine.low %v1400_v63, %v1416_v0  ;;  %v1149_v32 = vcombine.low %v4447_v48, %v4450_v49 }
 0x352   : > { %v1421_v1 = vcombine.low %v1325_v55, %v1332_v57  ;;  %v3640_v3 = vcombine.high %v1325_v55, %v1332_v57  ;;  %v1437_v4 = vcombine.low %v1341_v58, %v1348_v59  ;;  %v3641_v5 = vcombine.high %v1341_v58, %v1348_v59 }
 0x353   : > { %v1489_v11 = vpack.c.bf16 %v1417_v60, %v1417_v60  ;;  %v1491_v12 = vpack.c.bf16 %v1418_v62, %v1418_v62  ;;  %v1165_v34 = vcombine.low %v4461_v6, %v4464_v9  ;;  %v1493_v29 = vpack.c.bf16 %v1419_v19, %v1419_v19  ;;  %v2178_v19 = vld [vmem:[#allocation3] sm:$0xff] }
 0x354   : > { %v1428_v13 = vrot.slane %v1421_v1, %v4379_v2  ;;  %v1436_v14 = vrot.slane %v3640_v3, %v4379_v2  ;;  %v1444_v15 = vrot.slane %v1437_v4, %v4379_v2  ;;  %v1452_v16 = vrot.slane %v3641_v5, %v4379_v2 }
 0x355   : > { %v1806_v17 = vsel %vm1801_vm7, %v1489_v11, 0  ;;  %v1898_v18 = vsel %vm1801_vm7, %v1491_v12, 0  ;;  %v1185_v31 = vpack.c.bf16 %v1113_v23, %v1113_v23  ;;  %v1187_v33 = vpack.c.bf16 %v1114_v24, %v1114_v24 }
 0x356   : > { %3765 = vmatpush3.bf16.xpose.msra.mxu0 %v1806_v17  ;;  %3777 = vmatpush3.bf16.xpose.msra.mxu1 %v1898_v18  ;;  %v1453_v20 = vcombine.low %v1428_v13, %v1436_v14  ;;  %v1469_v21 = vcombine.low %v1444_v15, %v1452_v16  ;;  %v1096_v7 = vrot.slane %v1082_v22, %v4388_v10  ;;  %v1990_v38 = vsel %vm1801_vm7, %v1493_v29, 0 }
 0x357   : > { %3770 = vmatprep.subr.bf16.mxu0 %v4114_v25  ;;  %3788 = vmatprep.subr.bf16.mxu1 %v4114_v25  ;;  %v1112_v8 = vrot.slane %v1098_v26, %v4388_v10  ;;  %v1157_v35 = vrot.slane %v1149_v32, %v4388_v10  ;;  %v1173_v36 = vrot.slane %v1165_v34, %v4388_v10 }
 0x358   : > { %v1461_v27 = vrot.slane %v1453_v20, %v4388_v10  ;;  %v1477_v28 = vrot.slane %v1469_v21, %v4388_v10  ;;  %v1420_v39 = vcombine.high %v1400_v63, %v1416_v0  ;;  %v1454_v42 = vcombine.high %v1428_v13, %v1436_v14 }
 0x359   : > { %v1470_v43 = vcombine.high %v1444_v15, %v1452_v16  ;;  %v1115_v44 = vcombine.low %v1096_v7, %v1112_v8  ;;  %v1181_v45 = vcombine.low %v1157_v35, %v1173_v36  ;;  %v1116_v62 = vcombine.high %v1096_v7, %v1112_v8 }
 0x35a   : > { %v1485_v30 = vcombine.low %v1461_v27, %v1477_v28  ;;  %v1486_v41 = vcombine.high %v1461_v27, %v1477_v28  ;;  %v1495_v46 = vpack.c.bf16 %v1420_v39, %v1420_v39  ;;  %v1468_v50 = vrot.slane %v1454_v42, %v4388_v10 }
 0x35b   : > { %v1484_v52 = vrot.slane %v1470_v43, %v4388_v10  ;;  %v1189_v55 = vpack.c.bf16 %v1115_v44, %v1115_v44  ;;  %v1186_v57 = vpack.c.bf16 %v1181_v45, %v1181_v45  ;;  %v1182_v63 = vcombine.high %v1157_v35, %v1173_v36 }
 0x35c   : > { %v1490_v37 = vpack.c.bf16 %v1485_v30, %v1485_v30  ;;  %v1492_v47 = vpack.c.bf16 %v1486_v41, %v1486_v41  ;;  %v2082_v58 = vsel %vm1801_vm7, %v1495_v46, 0  ;;  %v1150_v0 = vcombine.high %v4447_v48, %v4450_v49 }
 0x35d   : > { %3767 = vmatmul.mubr.msk.bf16.vlgmr.msra.gmra.mrb[4].mxu0 %vm1801_vm7, %v1185_v31  ;;  %3779 = vmatmul.mubr.msk.bf16.vlgmr.msra.gmra.mrb[0].mxu1 %vm1801_vm7, %v1187_v33  ;;  %v1487_v60 = vcombine.low %v1468_v50, %v1484_v52  ;;  %v1166_v1 = vcombine.high %v4461_v6, %v4464_v9  ;;  %v1191_v4 = vpack.c.bf16 %v1116_v62, %v1116_v62 }
 0x35e   : > { %v1852_v40 = vsel %vm1801_vm7, %v1490_v37, 0  ;;  %3789 = vmatpush3.bf16.xpose.msra.mxu1 %v1990_v38  ;;  %3772 = vmatprep.mubr.msk.bf16.mxu0 %vm4115_vm6, %v4114_v25  ;;  %v1944_v59 = vsel %vm1801_vm7, %v1492_v47, 0  ;;  %v1188_v5 = vpack.c.bf16 %v1182_v63, %v1182_v63  ;;  %v1164_v11 = vrot.slane %v1150_v0, %v4388_v10 }
 0x35f   : > { %3771 = vmatpush3.bf16.xpose.msra.mxu0 %v1852_v40  ;;  %3790 = vmatprep.mubr.msk.bf16.mxu1 %vm4115_vm6, %v4114_v25  ;;  %v1494_v3 = vpack.c.bf16 %v1487_v60, %v1487_v60  ;;  %v1180_v12 = vrot.slane %v1166_v1, %v4388_v10  ;;  %v1488_v14 = vcombine.high %v1468_v50, %v1484_v52 }
 0x360   : > { %3782 = vmatprep.subr.bf16.mxu0 %v4114_v25  ;;  %3800 = vmatprep.subr.bf16.mxu1 %v4114_v25 }
 0x361   : > { %v2036_v13 = vsel %vm1801_vm7, %v1494_v3, 0  ;;  %v1183_v48 = vcombine.low %v1164_v11, %v1180_v12  ;;  %v1496_v49 = vpack.c.bf16 %v1488_v14, %v1488_v14  ;;  %v1184_v15 = vcombine.high %v1164_v11, %v1180_v12 }
 0x363   : > { %v1190_v6 = vpack.c.bf16 %v1183_v48, %v1183_v48  ;;  %v2128_v9 = vsel %vm1801_vm7, %v1496_v49, 0  ;;  %v1192_v16 = vpack.c.bf16 %v1184_v15, %v1184_v15 }
 0x365   : > { %3791 = vmatmul.mubr.msk.bf16.vlgmr.msra.gmra.mrb[4].mxu1 %vm1801_vm7, %v1189_v55 }
 0x366   : > { %3773 = vmatmul.mubr.msk.bf16.vlgmr.msra.gmra.mrb[8].mxu0 %vm1801_vm7, %v1186_v57  ;;  %3801 = vmatpush3.bf16.xpose.msra.mxu1 %v2082_v58 }
 0x367   : > { %3783 = vmatpush3.bf16.xpose.msra.mxu0 %v1944_v59  ;;  %3784 = vmatprep.mubr.msk.bf16.mxu0 %vm4115_vm6, %v4114_v25 }
 0x368   : > { %3802 = vmatprep.mubr.msk.bf16.mxu1 %vm4115_vm6, %v4114_v25  ;;  %3794 = vmatprep.subr.bf16.mxu0 %v4114_v25 }
 0x369   : > { %3812 = vmatprep.subr.bf16.mxu1 %v4114_v25 }
 0x36d   : > { %3803 = vmatmul.mubr.msk.bf16.vlgmr.msra.gmra.mrb[8].mxu1 %vm1801_vm7, %v1191_v4 }
 0x36e   : > { %3785 = vmatmul.mubr.msk.bf16.vlgmr.msra.gmra.mrb[12].mxu0 %vm1801_vm7, %v1188_v5  ;;  %3814 = vmatprep.mubr.msk.bf16.mxu1 %vm4115_vm6, %v4114_v25 }
 0x36f   : > { %3795 = vmatpush3.bf16.xpose.msra.mxu0 %v2036_v13  ;;  %3796 = vmatprep.mubr.msk.bf16.mxu0 %vm4115_vm6, %v4114_v25 }
 0x370   : > { %3806 = vmatprep.subr.bf16.mxu0 %v4114_v25 }
 0x376   : > { %3797 = vmatmul.mubr.msk.bf16.vlgmr.msra.gmra.mrb[16].mxu0 %vm1801_vm7, %v1190_v6 }
 0x377   : > { %3807 = vmatpush3.bf16.xpose.msra.mxu0 %v2128_v9  ;;  %3808 = vmatprep.mubr.msk.bf16.mxu0 %vm4115_vm6, %v4114_v25 }
 0x378   : > { %3818 = vmatprep.subr.bf16.mxu0 %v4114_v25 }
 0x37e   : > { %3809 = vmatmul.mubr.msk.bf16.vlgmr.msra.gmra.mrb[20].mxu0 %vm1801_vm7, %v1192_v16 }
 0x37f   : > { %3820 = vmatprep.mubr.msk.bf16.mxu0 %vm4115_vm6, %v4114_v25 }
 0x430   : > { %v1842_v17 = vpop.f32.mrb[4].mxu0  ;;  %v1934_v18 = vpop.f32.mrb[0].mxu1 }
 0x431   : > { %v2170_v20 = vmul.f32 0.35355338, %v1842_v17  ;;  %v2172_v21 = vmul.f32 0.35355338, %v1934_v18  ;;  %v3768_v22 = vpop.f32.mrb[5].mxu0  ;;  %v3780_v23 = vpop.f32.mrb[1].mxu1 }
 0x432   : > { %v1845_v24 = vpop.f32.mrb[6].mxu0  ;;  %v1937_v26 = vpop.f32.mrb[2].mxu1 }
 0x433   : > { %v3769_v27 = vpop.f32.mrb[7].mxu0  ;;  %v3781_v28 = vpop.f32.mrb[3].mxu1  ;;  %v2179_v32 = vadd.f32 %v2178_v19, %v2170_v20  ;;  %v4537_v29 = vadd.f32 %v2178_v19, %v2172_v21 }
 0x434   : > { %v4554_v18 = vpop.permute.xlu1 %1499  ;;  %v4556_v20 = vpop.permute.xlu0 %1497 }
 0x435   : > { %v2187_v34 = vsel %vm1801_vm7, %v2179_v32, -inf  ;;  %v2193_v8 = vsel %vm1801_vm7, %v4537_v29, -inf }
 0x436   : > { %2188 = vmax.xlane.f32.xlu0 %v2187_v34 }
 0x438   : > { %v2026_v30 = vpop.f32.mrb[4].mxu1  ;;  %v4558_v21 = vpop.permute.xlu1 %1501 }
 0x439   : > { %v1888_v31 = vpop.f32.mrb[8].mxu0  ;;  %v2174_v33 = vmul.f32 0.35355338, %v2026_v30  ;;  %v3792_v7 = vpop.f32.mrb[5].mxu1 }
 0x43a   : > { %v2171_v37 = vmul.f32 0.35355338, %v1888_v31  ;;  %v3774_v35 = vpop.f32.mrb[9].mxu0  ;;  %v2029_v36 = vpop.f32.mrb[6].mxu1  ;;  %2194 = vmax.xlane.f32.xlu0 %v2193_v8 }
 0x43b   : > { %v1891_v38 = vpop.f32.mrb[10].mxu0  ;;  %v3793_v39 = vpop.f32.mrb[7].mxu1  ;;  %v4541_v40 = vadd.f32 %v2178_v19, %v2174_v33 }
 0x43c   : > { %v3775_v41 = vpop.f32.mrb[11].mxu0  ;;  %v2180_v42 = vadd.f32 %v2178_v19, %v2171_v37  ;;  %v4560_v26 = vpop.permute.xlu1 %1503 }
 0x43d   : > { %v2199_v43 = vsel %vm1801_vm7, %v4541_v40, -inf }
 0x43e   : > { %2200 = vmax.xlane.f32.xlu0 %v2199_v43  ;;  %v2190_v44 = vsel %vm1801_vm7, %v2180_v42, -inf }
 0x43f   : > { %2191 = vmax.xlane.f32.xlu1 %v2190_v44 }
 0x440   : > { %v2118_v45 = vpop.f32.mrb[8].mxu1 }
 0x441   : > { %v1980_v46 = vpop.f32.mrb[12].mxu0  ;;  %v3804_v47 = vpop.f32.mrb[9].mxu1  ;;  %v2176_v52 = vmul.f32 0.35355338, %v2118_v45 }
 0x442   : > { %v2173_v50 = vmul.f32 0.35355338, %v1980_v46  ;;  %v3786_v55 = vpop.f32.mrb[13].mxu0  ;;  %v2121_v57 = vpop.f32.mrb[10].mxu1 }
 0x443   : > { %v1983_v58 = vpop.f32.mrb[14].mxu0  ;;  %v3805_v59 = vpop.f32.mrb[11].mxu1  ;;  %v2185_v0 = vadd.f32 %v2178_v19, %v2176_v52 }
 0x444   : > { %v3787_v60 = vpop.f32.mrb[15].mxu0  ;;  %v2182_v62 = vadd.f32 %v2178_v19, %v2173_v50 }
 0x445   : > { %v2205_v5 = vsel %vm1801_vm7, %v2185_v0, -inf }
 0x446   : > { %v2196_v63 = vsel %vm1801_vm7, %v2182_v62, -inf }
 0x447   : > { %2197 = vmax.xlane.f32.xlu0 %v2196_v63 }
 0x449   : > { %v2072_v1 = vpop.f32.mrb[16].mxu0 }
 0x44a   : > { %v2175_v3 = vmul.f32 0.35355338, %v2072_v1  ;;  %v3798_v4 = vpop.f32.mrb[17].mxu0 }
 0x44b   : > { %2206 = vmax.xlane.f32.xlu0 %v2205_v5  ;;  %v2075_v11 = vpop.f32.mrb[18].mxu0 }
 0x44c   : > { %v3799_v12 = vpop.f32.mrb[19].mxu0  ;;  %v2184_v13 = vadd.f32 %v2178_v19, %v2175_v3 }
 0x44e   : > { %v2202_v14 = vsel %vm1801_vm7, %v2184_v13, -inf }
 0x44f   : > { %2203 = vmax.xlane.f32.xlu1 %v2202_v14 }
 0x451   : > { %v2164_v48 = vpop.f32.mrb[20].mxu0 }
 0x452   : > { %v2177_v49 = vmul.f32 0.35355338, %v2164_v48  ;;  %v3810_v6 = vpop.f32.mrb[21].mxu0 }
 0x453   : > { %v2167_v9 = vpop.f32.mrb[22].mxu0 }
 0x454   : > { %v3811_v15 = vpop.f32.mrb[23].mxu0  ;;  %v2186_v16 = vadd.f32 %v2178_v19, %v2177_v49 }
 0x456   : > { %v2208_v17 = vsel %vm1801_vm7, %v2186_v16, -inf }
 0x457   : > { %2209 = vmax.xlane.f32.xlu1 %v2208_v17 }
 0x461   : > { %1505 = vrot.lane.b32.xlu0 %v4356_v51, %s4120_s12 }
 0x468   : > { %1507 = vrot.lane.b32.xlu1 %v4363_v54, %s4120_s12 }
 0x4c3   : > { %v2189_v22 = vpop.xlane.xlu0 %2188 }
 0x4c4   : > { %v2211_v23 = vsub.f32 %v2179_v32, %v2189_v22 }
 0x4c6   : > { %v2219_v24 = vmul.f32 1.442695, %v2211_v23 }
 0x4c7   : > { %v2195_v32 = vpop.xlane.xlu0 %2194 }
 0x4c8   : > { %3996 = vpow2.f32 %v2219_v24  ;;  %v2213_v33 = vsub.f32 %v4537_v29, %v2195_v32 }
 0x4ca   : > { %v2223_v8 = vmul.f32 1.442695, %v2213_v33 }
 0x4cb   : > { %v2201_v31 = vpop.xlane.xlu0 %2200 }
 0x4cc   : > { %v2192_v19 = vpop.xlane.xlu1 %2191  ;;  %v2215_v37 = vsub.f32 %v4541_v40, %v2201_v31 }
 0x4cd   : > { %v2212_v27 = vsub.f32 %v2180_v42, %v2192_v19 }
 0x4ce   : > { %v2227_v36 = vmul.f32 1.442695, %v2215_v37 }
 0x4cf   : > { %v2221_v28 = vmul.f32 1.442695, %v2212_v27 }
 0x4d1   : > { %3998 = vpow2.f32 %v2221_v28 }
 0x4d2   : > { %v4562_v51 = vpop.eup %3996  ;;  %4000 = vpow2.f32 %v2223_v8 }
 0x4d3   : > { %v2235_v54 = vsel %vm1801_vm7, %v4562_v51, 0.0  ;;  %4002 = vpow2.f32 %v2227_v36 }
 0x4d4   : > { %2236 = vadd.xlane.f32.xlu0 %v2235_v54  ;;  %v2198_v7 = vpop.xlane.xlu0 %2197 }
 0x4d5   : > { %v2214_v39 = vsub.f32 %v2182_v62, %v2198_v7 }
 0x4d7   : > { %v2225_v44 = vmul.f32 1.442695, %v2214_v39 }
 0x4d8   : > { %v2207_v41 = vpop.xlane.xlu0 %2206 }
 0x4db   : > { %v4566_v34 = vpop.eup %3998 }
 0x4dc   : > { %v2238_v30 = vsel %vm1801_vm7, %v4566_v34, 0.0  ;;  %v2204_v35 = vpop.xlane.xlu1 %2203  ;;  %v4576_v46 = vpop.eup %4000 }
 0x4dd   : > { %2239 = vadd.xlane.f32.xlu1 %v2238_v30  ;;  %v2216_v38 = vsub.f32 %v2184_v13, %v2204_v35  ;;  %v2241_v40 = vsel %vm1801_vm7, %v4576_v46, 0.0  ;;  %v4580_v47 = vpop.eup %4002 }
 0x4de   : > { %v2247_v50 = vsel %vm1801_vm7, %v4580_v47, 0.0 }
 0x4df   : > { %v2229_v43 = vmul.f32 1.442695, %v2216_v38 }
 0x4e1   : > { %4004 = vpow2.f32 %v2229_v43 }
 0x4e2   : > { %4006 = vpow2.f32 %v2225_v44 }
 0x4e4   : > { %v2210_v42 = vpop.xlane.xlu1 %2209 }
 0x4e5   : > { %v2218_v45 = vsub.f32 %v2186_v16, %v2210_v42 }
 0x4e7   : > { %v2233_v29 = vmul.f32 1.442695, %v2218_v45 }
 0x4e8   : > { %v1508_v11 = vpop.permute.xlu1 %1507 }
 0x4e9   : > { %v1589_v19 = vcombine.low %v4554_v18, %v1508_v11  ;;  %v1590_v27 = vcombine.high %v4554_v18, %v1508_v11 }
 0x4ea   : > { %1509 = vrot.lane.b32.xlu0 %v4359_v53, %s4120_s12  ;;  %v2217_v53 = vsub.f32 %v2185_v0, %v2207_v41  ;;  %v1506_v0 = vpop.permute.xlu0 %1505 }
 0x4eb   : > { %v4584_v52 = vpop.eup %4004  ;;  %v1521_v3 = vcombine.low %v4556_v20, %v1506_v0  ;;  %v1522_v4 = vcombine.high %v4556_v20, %v1506_v0  ;;  %v1597_v36 = vrot.slane %v1589_v19, %v4379_v2  ;;  %v1604_v38 = vrot.slane %v1590_v27, %v4379_v2 }
 0x4ec   : > { %v4586_v55 = vpop.eup %4006  ;;  %v2250_v57 = vsel %vm1801_vm7, %v4584_v52, 0.0 }
 0x4ed   : > { %v2244_v59 = vsel %vm1801_vm7, %v4586_v55, 0.0  ;;  %v1529_v14 = vrot.slane %v1521_v3, %v4379_v2  ;;  %v1536_v48 = vrot.slane %v1522_v4, %v4379_v2 }
 0x4ee   : > { %1511 = vrot.lane.b32.xlu1 %v4366_v56, %s4120_s12  ;;  %v2231_v56 = vmul.f32 1.442695, %v2217_v53 }
 0x4f0   : > { %4008 = vpow2.f32 %v2231_v56 }
 0x4f1   : > { %4010 = vpow2.f32 %v2233_v29 }
 0x4fa   : > { %v4590_v58 = vpop.eup %4008 }
 0x4fb   : > { %v4594_v60 = vpop.eup %4010  ;;  %v2253_v62 = vsel %vm1801_vm7, %v4590_v58, 0.0 }
 0x4fc   : > { %v2256_v63 = vsel %vm1801_vm7, %v4594_v60, 0.0 }
 0x509   : > { %2242 = vadd.xlane.f32.xlu0 %v2241_v40 }
 0x50d   : > { %2248 = vadd.xlane.f32.xlu0 %v2247_v50 }
 0x511   : > { %2251 = vadd.xlane.f32.xlu0 %v2250_v57 }
 0x512   : > { %2245 = vadd.xlane.f32.xlu1 %v2244_v59 }
 0x515   : > { %2254 = vadd.xlane.f32.xlu0 %v2253_v62 }
 0x516   : > { %2257 = vadd.xlane.f32.xlu1 %v2256_v63 }
 0x561   : > { %v2237_v1 = vpop.xlane.xlu0 %2236 }
 0x562   : > { %4012 = vrcp.f32 %v2237_v1 }
 0x565   : > { %v1510_v5 = vpop.permute.xlu0 %1509 }
 0x566   : > { %v1537_v12 = vcombine.low %v4558_v21, %v1510_v5  ;;  %v1538_v13 = vcombine.high %v4558_v21, %v1510_v5 }
 0x568   : > { %v1545_v49 = vrot.slane %v1537_v12, %v4379_v2  ;;  %v1552_v6 = vrot.slane %v1538_v13, %v4379_v2 }
 0x56a   : > { %v1553_v9 = vcombine.low %v1529_v14, %v1545_v49  ;;  %v1554_v15 = vcombine.high %v1529_v14, %v1545_v49  ;;  %v1569_v16 = vcombine.low %v1536_v48, %v1552_v6  ;;  %v1570_v17 = vcombine.high %v1536_v48, %v1552_v6  ;;  %v2240_v22 = vpop.xlane.xlu1 %2239 }
 0x56b   : > { %4014 = vrcp.f32 %v2240_v22 }
 0x56c   : > { %v1561_v20 = vrot.slane %v1553_v9, %v4388_v10  ;;  %v1568_v23 = vrot.slane %v1554_v15, %v4388_v10  ;;  %v1577_v21 = vrot.slane %v1569_v16, %v4388_v10  ;;  %v1584_v24 = vrot.slane %v1570_v17, %v4388_v10  ;;  %v4013_v40 = vpop.eup %4012 }
 0x56d   : > { %v2267_v11 = vmul.f32 %v4013_v40, %v4562_v51 }
 0x56e   : > { %v1657_v28 = vcombine.low %v1561_v20, %v1568_v23  ;;  %v3642_v54 = vcombine.high %v1561_v20, %v1568_v23  ;;  %v1673_v30 = vcombine.low %v1577_v21, %v1584_v24  ;;  %v3643_v32 = vcombine.high %v1577_v21, %v1584_v24  ;;  %v1512_v31 = vpop.permute.xlu1 %1511 }
 0x56f   : > { %v1605_v33 = vcombine.low %v4560_v26, %v1512_v31  ;;  %v1606_v7 = vcombine.high %v4560_v26, %v1512_v31  ;;  %v2275_v17 = vpack.c.bf16 %v2267_v11, %v2267_v11 }
 0x570   : > { %v4617_v8 = vrot.slane %v1657_v28, %v4379_v2  ;;  %v4620_v37 = vrot.slane %v3642_v54, %v4379_v2  ;;  %v4623_v35 = vrot.slane %v1673_v30, %v4379_v2  ;;  %v4626_v18 = vrot.slane %v3643_v32, %v4379_v2 }
 0x571   : > { %v1613_v39 = vrot.slane %v1605_v33, %v4379_v2  ;;  %v1620_v26 = vrot.slane %v1606_v7, %v4379_v2 }
 0x572   : > { %v1689_v41 = vcombine.low %v4617_v8, %v4620_v37  ;;  %v1705_v42 = vcombine.low %v4623_v35, %v4626_v18  ;;  %v1706_v33 = vcombine.high %v4623_v35, %v4626_v18 }
 0x573   : > { %v1621_v53 = vcombine.low %v1597_v36, %v1613_v39  ;;  %v1622_v43 = vcombine.high %v1597_v36, %v1613_v39  ;;  %v1637_v44 = vcombine.low %v1604_v38, %v1620_v26  ;;  %v1638_v45 = vcombine.high %v1604_v38, %v1620_v26 }
 0x574   : > { %v1697_v56 = vrot.slane %v1689_v41, %v4388_v10  ;;  %v1713_v29 = vrot.slane %v1705_v42, %v4388_v10  ;;  %v1720_v38 = vrot.slane %v1706_v33, %v4388_v10 }
 0x575   : > { %v1629_v50 = vrot.slane %v1621_v53, %v4388_v10  ;;  %v1636_v57 = vrot.slane %v1622_v43, %v4388_v10  ;;  %v1645_v59 = vrot.slane %v1637_v44, %v4388_v10  ;;  %v1652_v62 = vrot.slane %v1638_v45, %v4388_v10  ;;  %v4015_v20 = vpop.eup %4014 }
 0x576   : > { %v1721_v63 = vcombine.low %v1697_v56, %v1713_v29  ;;  %v1722_v0 = vcombine.high %v1697_v56, %v1713_v29  ;;  %v2268_v19 = vmul.f32 %v4015_v20, %v4566_v34  ;;  %v1690_v34 = vcombine.high %v4617_v8, %v4620_v37 }
 0x577   : > { %v1725_v1 = vcombine.low %v1629_v50, %v1636_v57  ;;  %v3644_v3 = vcombine.high %v1629_v50, %v1636_v57  ;;  %v1741_v4 = vcombine.low %v1645_v59, %v1652_v62  ;;  %v3645_v5 = vcombine.high %v1645_v59, %v1652_v62 }
 0x578   : > { %v1793_v12 = vpack.c.bf16 %v1721_v63, %v1721_v63  ;;  %v1795_v9 = vpack.c.bf16 %v1722_v0, %v1722_v0  ;;  %v2276_v30 = vpack.c.bf16 %v2268_v19, %v2268_v19  ;;  %v1704_v36 = vrot.slane %v1690_v34, %v4388_v10 }
 0x579   : > { %v1732_v13 = vrot.slane %v1725_v1, %v4379_v2  ;;  %v1740_v14 = vrot.slane %v3644_v3, %v4379_v2  ;;  %v1748_v48 = vrot.slane %v1741_v4, %v4379_v2  ;;  %v1756_v49 = vrot.slane %v3645_v5, %v4379_v2 }
 0x57a   : > { %v2288_v6 = vsel %vm2286_vm8, %v1793_v12, 0  ;;  %v2380_v23 = vsel %vm2286_vm8, %v1795_v9, 0  ;;  %v1723_v26 = vcombine.low %v1704_v36, %v1720_v38  ;;  %v1724_v40 = vcombine.high %v1704_v36, %v1720_v38 }
 0x57b   : > { %3813 = vmatpush3.bf16.msra.mxu1 %v2288_v6  ;;  %v1757_v15 = vcombine.low %v1732_v13, %v1740_v14  ;;  %v1773_v16 = vcombine.low %v1748_v48, %v1756_v49  ;;  %v1758_v42 = vcombine.high %v1732_v13, %v1740_v14  ;;  %v1774_v53 = vcombine.high %v1748_v48, %v1756_v49 }
 0x57c   : > { %3824 = vmatprep.subr.bf16.mxu1 %v4114_v25  ;;  %v1797_v37 = vpack.c.bf16 %v1723_v26, %v1723_v26  ;;  %v1799_v62 = vpack.c.bf16 %v1724_v40, %v1724_v40 }
 0x57d   : > { %v1765_v51 = vrot.slane %v1757_v15, %v4388_v10  ;;  %v1781_v22 = vrot.slane %v1773_v16, %v4388_v10  ;;  %v1772_v35 = vrot.slane %v1758_v42, %v4388_v10  ;;  %v1788_v18 = vrot.slane %v1774_v53, %v4388_v10 }
 0x57e   : > { %3815 = vmatmul.mubr.msk.bf16.vlgmr.msra.gmra.mrb[12].mxu1 %vm1801_vm7, %v2275_v17  ;;  %v2472_v29 = vsel %vm2286_vm8, %v1797_v37, 0  ;;  %v2564_v11 = vsel %vm2286_vm8, %v1799_v62, 0 }
 0x57f   : > { %3825 = vmatpush3.bf16.msra.mxu1 %v2380_v23  ;;  %v1789_v21 = vcombine.low %v1765_v51, %v1781_v22  ;;  %v1790_v24 = vcombine.high %v1765_v51, %v1781_v22  ;;  %3826 = vmatprep.mubr.msk.bf16.mxu1 %vm4115_vm6, %v4114_v25  ;;  %v1792_v12 = vcombine.high %v1772_v35, %v1788_v18 }
 0x580   : > { %3836 = vmatprep.subr.bf16.mxu1 %v4114_v25 }
 0x581   : > { %v1794_v27 = vpack.c.bf16 %v1789_v21, %v1789_v21  ;;  %v1796_v54 = vpack.c.bf16 %v1790_v24, %v1790_v24  ;;  %v1800_v14 = vpack.c.bf16 %v1792_v12, %v1792_v12 }
 0x583   : > { %v2334_v28 = vsel %vm2286_vm8, %v1794_v27, 0  ;;  %v2426_v32 = vsel %vm2286_vm8, %v1796_v54, 0 }
 0x584   : > { %3819 = vmatpush3.bf16.msra.mxu0 %v2334_v28 }
 0x585   : > { %3830 = vmatprep.subr.bf16.mxu0 %v4114_v25 }
 0x587   : > { %3821 = vmatmul.mubr.msk.bf16.vlgmr.msra.gmra.mrb[24].mxu0 %vm1801_vm7, %v2276_v30 }
 0x588   : > { %3831 = vmatpush3.bf16.msra.mxu0 %v2426_v32  ;;  %3832 = vmatprep.mubr.msk.bf16.mxu0 %vm4115_vm6, %v4114_v25 }
 0x589   : > { %3842 = vmatprep.subr.bf16.mxu0 %v4114_v25 }
 0x596   : > { %v2243_v31 = vpop.xlane.xlu0 %2242 }
 0x597   : > { %4016 = vrcp.f32 %v2243_v31 }
 0x59a   : > { %v2249_v7 = vpop.xlane.xlu0 %2248 }
 0x59b   : > { %4018 = vrcp.f32 %v2249_v7 }
 0x59e   : > { %v2252_v39 = vpop.xlane.xlu0 %2251 }
 0x59f   : > { %v2246_v41 = vpop.xlane.xlu1 %2245 }
 0x5a0   : > { %4020 = vrcp.f32 %v2246_v41 }
 0x5a1   : > { %v4017_v43 = vpop.eup %4016 }
 0x5a2   : > { %v2269_v44 = vmul.f32 %v4017_v43, %v4576_v46  ;;  %v2255_v8 = vpop.xlane.xlu0 %2254  ;;  %v1791_v46 = vcombine.low %v1772_v35, %v1788_v18 }
 0x5a3   : > { %4022 = vrcp.f32 %v2255_v8  ;;  %v2258_v57 = vpop.xlane.xlu1 %2257 }
 0x5a4   : > { %4024 = vrcp.f32 %v2252_v39  ;;  %v2277_v45 = vpack.c.bf16 %v2269_v44, %v2269_v44  ;;  %v1798_v0 = vpack.c.bf16 %v1791_v46, %v1791_v46 }
 0x5a5   : > { %v4019_v56 = vpop.eup %4018  ;;  %4026 = vrcp.f32 %v2258_v57 }
 0x5a6   : > { %3827 = vmatmul.mubr.msk.bf16.vlgmr.msra.gmra.mrb[16].mxu1 %vm1801_vm7, %v2277_v45  ;;  %v2271_v50 = vmul.f32 %v4019_v56, %v4580_v47  ;;  %v2518_v47 = vsel %vm2286_vm8, %v1798_v0, 0 }
 0x5a7   : > { %3837 = vmatpush3.bf16.msra.mxu1 %v2472_v29  ;;  %3838 = vmatprep.mubr.msk.bf16.mxu1 %vm4115_vm6, %v4114_v25 }
 0x5a8   : > { %3848 = vmatprep.subr.bf16.mxu1 %v4114_v25  ;;  %v2279_v1 = vpack.c.bf16 %v2271_v50, %v2271_v50 }
 0x5aa   : > { %v4021_v59 = vpop.eup %4020 }
 0x5ab   : > { %v2270_v63 = vmul.f32 %v4021_v59, %v4586_v55 }
 0x5ad   : > { %v4023_v3 = vpop.eup %4022  ;;  %v2278_v4 = vpack.c.bf16 %v2270_v63, %v2270_v63 }
 0x5ae   : > { %v4025_v5 = vpop.eup %4024  ;;  %3839 = vmatmul.mubr.msk.bf16.vlgmr.msra.gmra.mrb[20].mxu1 %vm1801_vm7, %v2279_v1  ;;  %v2273_v13 = vmul.f32 %v4023_v3, %v4590_v58  ;;  %v2610_v58 = vsel %vm2286_vm8, %v1800_v14, 0 }
 0x5af   : > { %3833 = vmatmul.mubr.msk.bf16.vlgmr.msra.gmra.mrb[28].mxu0 %vm1801_vm7, %v2278_v4  ;;  %3849 = vmatpush3.bf16.msra.mxu1 %v2564_v11  ;;  %v2272_v55 = vmul.f32 %v4025_v5, %v4584_v52  ;;  %v4027_v6 = vpop.eup %4026 }
 0x5b0   : > { %3843 = vmatpush3.bf16.msra.mxu0 %v2518_v47  ;;  %3844 = vmatprep.mubr.msk.bf16.mxu0 %vm4115_vm6, %v4114_v25  ;;  %v2281_v48 = vpack.c.bf16 %v2273_v13, %v2273_v13  ;;  %v2274_v52 = vmul.f32 %v4027_v6, %v4594_v60 }
 0x5b1   : > { %3850 = vmatprep.mubr.msk.bf16.mxu1 %vm4115_vm6, %v4114_v25  ;;  %3854 = vmatprep.subr.bf16.mxu0 %v4114_v25  ;;  %v2280_v49 = vpack.c.bf16 %v2272_v55, %v2272_v55 }
 0x5b2   : > { %3860 = vmatprep.subr.bf16.mxu1 %v4114_v25  ;;  %v2282_v9 = vpack.c.bf16 %v2274_v52, %v2274_v52 }
 0x5b6   : > { %3851 = vmatmul.mubr.msk.bf16.vlgmr.msra.gmra.mrb[24].mxu1 %vm1801_vm7, %v2281_v48 }
 0x5b7   : > { %3845 = vmatmul.mubr.msk.bf16.vlgmr.msra.gmra.mrb[32].mxu0 %vm1801_vm7, %v2280_v49  ;;  %3864 = vmatprep.mubr.msk.bf16.mxu1 %vm4115_vm6, %v4114_v25 }
 0x5b8   : > { %3855 = vmatpush3.bf16.msra.mxu0 %v2610_v58  ;;  %3856 = vmatprep.mubr.msk.bf16.mxu0 %vm4115_vm6, %v4114_v25 }
 0x5b9   : > { %3868 = vmatprep.subr.bf16.mxu0 %v4114_v25 }
 0x5bf   : > { %3857 = vmatmul.mubr.msk.bf16.vlgmr.msra.gmra.mrb[36].mxu0 %vm1801_vm7, %v2282_v9 }
 0x5c0   : > { %3872 = vmatprep.mubr.msk.bf16.mxu0 %vm4115_vm6, %v4114_v25 }
 0x651   : > { %v2324_v15 = vpop.f32.mrb[12].mxu1 }
 0x652   : > { %v3816_v16 = vpop.f32.mrb[13].mxu1 }
 0x653   : > { %v2327_v17 = vpop.f32.mrb[14].mxu1 }
 0x654   : > { %v3817_v51 = vpop.f32.mrb[15].mxu1 }
 0x65a   : > { %v2370_v22 = vpop.f32.mrb[24].mxu0 }
 0x65b   : > { %v3822_v20 = vpop.f32.mrb[25].mxu0 }
 0x65c   : > { %v2373_v23 = vpop.f32.mrb[26].mxu0 }
 0x65d   : > { %v3823_v21 = vpop.f32.mrb[27].mxu0 }
 0x679   : > { %v2416_v24 = vpop.f32.mrb[16].mxu1 }
 0x67a   : > { %v3828_v19 = vpop.f32.mrb[17].mxu1 }
 0x67b   : > { %v2419_v27 = vpop.f32.mrb[18].mxu1 }
 0x67c   : > { %v3829_v60 = vpop.f32.mrb[19].mxu1 }
 0x681   : > { %v2508_v28 = vpop.f32.mrb[20].mxu1 }
 0x682   : > { %v2462_v54 = vpop.f32.mrb[28].mxu0  ;;  %v2652_v30 = vcombine.low %v2324_v15, %v2508_v28  ;;  %v2653_v32 = vcombine.high %v2324_v15, %v2508_v28  ;;  %v3840_v31 = vpop.f32.mrb[21].mxu1 }
 0x683   : > { %v3834_v34 = vpop.f32.mrb[29].mxu0  ;;  %v2511_v33 = vpop.f32.mrb[22].mxu1 }
 0x684   : > { %v2465_v7 = vpop.f32.mrb[30].mxu0  ;;  %v3841_v36 = vpop.f32.mrb[23].mxu1  ;;  %v2660_v35 = vrot.slane %v2652_v30, %v4379_v2  ;;  %v2667_v18 = vrot.slane %v2653_v32, %v4379_v2 }
 0x685   : > { %v3835_v38 = vpop.f32.mrb[31].mxu0 }
 0x689   : > { %v2600_v39 = vpop.f32.mrb[24].mxu1 }
 0x68a   : > { %v2554_v26 = vpop.f32.mrb[32].mxu0  ;;  %v2668_v41 = vcombine.low %v2416_v24, %v2600_v39  ;;  %v2669_v42 = vcombine.high %v2416_v24, %v2600_v39  ;;  %v3852_v53 = vpop.f32.mrb[25].mxu1 }
 0x68b   : > { %v2720_v43 = vcombine.low %v2370_v22, %v2554_v26  ;;  %v2721_v44 = vcombine.high %v2370_v22, %v2554_v26  ;;  %v3846_v8 = vpop.f32.mrb[33].mxu0  ;;  %v2603_v37 = vpop.f32.mrb[26].mxu1 }
 0x68c   : > { %v2676_v45 = vrot.slane %v2668_v41, %v4379_v2  ;;  %v2683_v56 = vrot.slane %v2669_v42, %v4379_v2  ;;  %v2557_v29 = vpop.f32.mrb[34].mxu0  ;;  %v3853_v40 = vpop.f32.mrb[27].mxu1 }
 0x68d   : > { %v3847_v46 = vpop.f32.mrb[35].mxu0  ;;  %v2728_v9 = vrot.slane %v2720_v43, %v4379_v2  ;;  %v2735_v15 = vrot.slane %v2721_v44, %v4379_v2  ;;  %v3980_v44 = vld [vmem:[%s4276_s18] sm:$0xff]  }
 0x68e   : > { %v2684_v50 = vcombine.low %v2660_v35, %v2676_v45  ;;  %v2685_v57 = vcombine.high %v2660_v35, %v2676_v45  ;;  %v2700_v59 = vcombine.low %v2667_v18, %v2683_v56  ;;  %v2701_v62 = vcombine.high %v2667_v18, %v2683_v56  ;;  %3861 = vmatpush3.bf16.msra.mxu1 %v3980_v44 }
 0x68f   : > { %3862 = vmatprep.subr.bf16.mxu1 %v4114_v25 }
 0x690   : > { %v2692_v63 = vrot.slane %v2684_v50, %v4388_v10  ;;  %v2699_v0 = vrot.slane %v2685_v57, %v4388_v10  ;;  %v2708_v1 = vrot.slane %v2700_v59, %v4388_v10  ;;  %v2715_v3 = vrot.slane %v2701_v62, %v4388_v10  ;;  %v3981_v62 = vld [vmem:[%s4276_s18 + $0x8] sm:$0xff]  }
 0x692   : > { %v2788_v4 = vcombine.low %v2692_v63, %v2699_v0  ;;  %v3662_v5 = vcombine.high %v2692_v63, %v2699_v0  ;;  %v2804_v11 = vcombine.low %v2708_v1, %v2715_v3  ;;  %v3663_v47 = vcombine.high %v2708_v1, %v2715_v3  ;;  %v2646_v12 = vpop.f32.mrb[36].mxu0  ;;  %3863 = vmatpush3.bf16.msra.mxu1 %v3981_v62 }
 0x693   : > { %v2736_v13 = vcombine.low %v2462_v54, %v2646_v12  ;;  %v2737_v55 = vcombine.high %v2462_v54, %v2646_v12  ;;  %v3858_v14 = vpop.f32.mrb[37].mxu0  ;;  %3876 = vmatprep.subr.bf16.mxu1 %v4114_v25 }
 0x694   : > { %v2795_v48 = vrot.slane %v2788_v4, %v4379_v2  ;;  %v2803_v49 = vrot.slane %v3662_v5, %v4379_v2  ;;  %v2811_v6 = vrot.slane %v2804_v11, %v4379_v2  ;;  %v2819_v58 = vrot.slane %v3663_v47, %v4379_v2  ;;  %v2649_v52 = vpop.f32.mrb[38].mxu0 }
 0x695   : > { %v2744_v16 = vrot.slane %v2736_v13, %v4379_v2  ;;  %v2751_v17 = vrot.slane %v2737_v55, %v4379_v2  ;;  %v3859_v51 = vpop.f32.mrb[39].mxu0 }
 0x696   : > { %v2821_v22 = vcombine.high %v2795_v48, %v2803_v49  ;;  %v2837_v20 = vcombine.high %v2811_v6, %v2819_v58  ;;  %v2820_v23 = vcombine.low %v2795_v48, %v2803_v49  ;;  %v2836_v21 = vcombine.low %v2811_v6, %v2819_v58 }
 0x697   : > { %v2752_v24 = vcombine.low %v2728_v9, %v2744_v16  ;;  %v2753_v19 = vcombine.high %v2728_v9, %v2744_v16  ;;  %v2768_v27 = vcombine.low %v2735_v15, %v2751_v17  ;;  %v2769_v60 = vcombine.high %v2735_v15, %v2751_v17 }
 0x698   : > { %v2835_v28 = vrot.slane %v2821_v22, %v4388_v10  ;;  %v2851_v54 = vrot.slane %v2837_v20, %v4388_v10  ;;  %v2828_v30 = vrot.slane %v2820_v23, %v4388_v10  ;;  %v2844_v32 = vrot.slane %v2836_v21, %v4388_v10  ;;  %v3669_v22 = vld [vmem:[%s4912_s28] ss:$0 sm:$0xff] }
 0x699   : > { %v2760_v31 = vrot.slane %v2752_v24, %v4388_v10  ;;  %v2767_v34 = vrot.slane %v2753_v19, %v4388_v10  ;;  %v2776_v33 = vrot.slane %v2768_v27, %v4388_v10  ;;  %v2783_v7 = vrot.slane %v2769_v60, %v4388_v10  ;;  %v4040_v20 = vld [vmem:[#allocation2] sm:$0xff]  ;;  %v4041_v27 = vld [vmem:[#allocation2 + $0x8] sm:$0xff] }
 0x69a   : > { %v2854_v36 = vcombine.low %v2835_v28, %v2851_v54  ;;  %v2852_v38 = vcombine.low %v2828_v30, %v2844_v32  ;;  %v2853_v39 = vcombine.high %v2828_v30, %v2844_v32  ;;  %v2855_v26 = vcombine.high %v2835_v28, %v2851_v54 }
 0x69b   : > { %v2856_v41 = vcombine.low %v2760_v31, %v2767_v34  ;;  %v3664_v42 = vcombine.high %v2760_v31, %v2767_v34  ;;  %v2872_v53 = vcombine.low %v2776_v33, %v2783_v7  ;;  %v3665_v43 = vcombine.high %v2776_v33, %v2783_v7 }
 0x69d   : > { %v2863_v8 = vrot.slane %v2856_v41, %v4379_v2  ;;  %v2871_v37 = vrot.slane %v3664_v42, %v4379_v2  ;;  %v2879_v35 = vrot.slane %v2872_v53, %v4379_v2  ;;  %v2887_v18 = vrot.slane %v3665_v43, %v4379_v2  ;;  %v3982_v53 = vld [vmem:[%s4293_s5] sm:$0xff]   ;;  %v3983_v43 = vld [vmem:[%s4293_s5 + $0x8] sm:$0xff]  }
 0x69e   : > { %3869 = vmatpush3.bf16.msra.mxu0 %v3982_v53 }
 0x69f   : > { %v2889_v45 = vcombine.high %v2863_v8, %v2871_v37  ;;  %v2905_v56 = vcombine.high %v2879_v35, %v2887_v18  ;;  %v2888_v29 = vcombine.low %v2863_v8, %v2871_v37  ;;  %v2904_v40 = vcombine.low %v2879_v35, %v2887_v18  ;;  %3870 = vmatprep.subr.bf16.mxu0 %v4114_v25 }
 0x6a1   : > { %v2903_v46 = vrot.slane %v2889_v45, %v4388_v10  ;;  %v2919_v50 = vrot.slane %v2905_v56, %v4388_v10  ;;  %v2896_v57 = vrot.slane %v2888_v29, %v4388_v10  ;;  %v2912_v59 = vrot.slane %v2904_v40, %v4388_v10  ;;  %v3670_v40 = vld [vmem:[%s733_s16] ss:$0 sm:$0xff]  ;;  %s4915_s16 = sld [smem:[#allocation19_spill]] (!%p3687_p11) }
 0x6a2   : > { %3871 = vmatpush3.bf16.msra.mxu0 %v3983_v43 }
 0x6a3   : > { %v2922_v63 = vcombine.low %v2903_v46, %v2919_v50  ;;  %v2921_v0 = vcombine.high %v2896_v57, %v2912_v59  ;;  %v2920_v1 = vcombine.low %v2896_v57, %v2912_v59  ;;  %v2923_v2 = vcombine.high %v2903_v46, %v2919_v50  ;;  %v3671_v59 = vld [vmem:[%s736_s0] ss:$0 sm:$0xff] }
 0x6a5   : > { %v3968_v3 = vpack.i.bf16 %v2922_v63, %v2854_v36  ;;  %v3963_v4 = vpack.i.bf16 %v2921_v0, %v2853_v39  ;;  %v3973_v5 = vpack.i.bf16 %v2923_v2, %v2855_v26  ;;  %v3984_v2 = vld [vmem:[%s4303_s25] sm:$0xff]  }
 0x6a7   : > { %3969 = vrot.lane.b32.xlu1 %v3968_v3, %s4123_s24  ;;  %3964 = vrot.lane.b32.xlu0 %v3963_v4, %s4124_s27  ;;  %v3985_v3 = vld [vmem:[%s4303_s25 + $0x8] sm:$0xff]   ;;  %v3986_v4 = vld [vmem:[%s4303_s25 + $0x10] sm:$0xff]   ;;  %s4914_s27 = sld [smem:[#allocation21_spill]] (!%p3687_p11) }
 0x6ab   : > { %3974 = vrot.lane.b32.xlu1 %v3973_v5, %s4125_s26  ;;  %v3987_v5 = vld [vmem:[%s4303_s25 + $0x18] sm:$0xff]  }
 0x719   : > { %v3970_v11 = vpop.permute.xlu1 %3969  ;;  %v3965_v10 = vpop.permute.xlu0 %3964 }
 0x71a   : > { %v3967_v47 = vunpack.i.h.bf16 %v3965_v10  ;;  %v3966_v12 = vunpack.i.l.bf16 %v3965_v10  ;;  %v3972_v13 = vunpack.i.h.bf16 %v3970_v11  ;;  %v3971_v55 = vunpack.i.l.bf16 %v3970_v11  ;;  %v3988_v11 = vld [vmem:[%s4303_s25 + $0x20] sm:$0xff]   ;;  %v3989_v10 = vld [vmem:[%s4303_s25 + $0x28] sm:$0xff]  }
 0x71c   : > { %v2948_v14 = vsel %vm1801_vm7, %v2852_v38, %v3966_v12  ;;  %v2949_v48 = vsel %vm1801_vm7, %v2920_v1, %v3967_v47  ;;  %v3990_v47 = vld [vmem:[%s4303_s25 + $0x30] sm:$0xff]   ;;  %v3991_v12 = vld [vmem:[%s4303_s25 + $0x38] sm:$0xff]  }
 0x71d   : > { %v3975_v49 = vpop.permute.xlu1 %3974  ;;  %v2951_v52 = vsel %vm2950_vm9, %v2948_v14, %v3971_v55  ;;  %v2952_v9 = vsel %vm2950_vm9, %v2949_v48, %v3972_v13  ;;  %v3672_v13 = vld [vmem:[%s744_s15] ss:$0 sm:$0xff]  ;;  %s4916_s15 = sld [smem:[#allocation20_spill]] (!%p3687_p11) }
 0x71e   : > { %v3977_v6 = vunpack.i.h.bf16 %v3975_v49  ;;  %v3976_v58 = vunpack.i.l.bf16 %v3975_v49 }
 0x720   : > { %v2954_v15 = vsel %vm2953_vm10, %v2951_v52, %v3976_v58  ;;  %v2955_v16 = vsel %vm2953_vm10, %v2952_v9, %v3977_v6 }
 0x721   : > { %v2960_v17 = vpack.c.bf16 %v2955_v16, %v2954_v15 }
 0x723   : > { %3865 = vmatmul.mubr.msk.bf16.vlgmr.msra.gmra.mrb[28].mxu1 %vm781_vm5, %v2960_v17 }
 0x724   : > { %3892 = vmatprep.mubr.msk.bf16.mxu1 %vm4115_vm6, %v4114_v25  ;;  %3877 = vmatpush3.bf16.msra.mxu1 %v3984_v2 }
 0x725   : > { %3878 = vmatprep.subr.bf16.mxu1 %v4114_v25 }
 0x728   : > { %3879 = vmatpush3.bf16.msra.mxu1 %v3985_v3  ;;  %v4129_v3 = vmov (!%p3687_p11), 1966171168  }
 0x729   : > { %3880 = vmatprep.subr.bf16.mxu1 %v4114_v25 }
 0x72c   : > { %3881 = vmatpush3.bf16.msra.mxu1 %v3986_v4  ;;  %v3400_v4 = vunpack.c.l.s4 (!%p3687_p11), %v4129_v3 }
 0x72d   : > { %3882 = vmatprep.subr.bf16.mxu1 %v4114_v25 }
 0x730   : > { %3883 = vmatpush3.bf16.msra.mxu1 %v3987_v5  ;;  %v3401_v5 = vunpack.c.0.s8 (!%p3687_p11), %v3400_v4 }
 0x731   : > { %3884 = vmatprep.subr.bf16.mxu1 %v4114_v25 }
 0x734   : > { %3885 = vmatpush3.bf16.msra.mxu1 %v3988_v11  ;;  %v3404_v11 = vsub.s32 (!%p3687_p11), %v3401_v5, %v4374_v61 }
 0x735   : > { %3886 = vmatprep.subr.bf16.mxu1 %v4114_v25 }
 0x738   : > { %3887 = vmatpush3.bf16.msra.mxu1 %v3989_v10 }
 0x739   : > { %3888 = vmatprep.subr.bf16.mxu1 %v4114_v25 }
 0x73c   : > { %3889 = vmatpush3.bf16.msra.mxu1 %v3990_v47 }
 0x73d   : > { %3890 = vmatprep.subr.bf16.mxu1 %v4114_v25 }
 0x740   : > { %3891 = vmatpush3.bf16.msra.mxu1 %v3991_v12 }
 0x7f6   : > { %v3010_v51 = vpop.f32.mrb[28].mxu1 }
 0x7f7   : > { %v3017_v23 = vadd.f32 %v4040_v20, %v3010_v51  ;;  %v3866_v21 = vpop.f32.mrb[29].mxu1 }
 0x7f8   : > { %v3013_v24 = vpop.f32.mrb[30].mxu1 }
 0x7f9   : > { %v4751_v19 = vadd.f32 %v3669_v22, %v3017_v23  ;;  %v3018_v60 = vadd.f32 %v4041_v27, %v3013_v24  ;;  %v3867_v28 = vpop.f32.mrb[31].mxu1 }
 0x7fb   : > { %v4753_v54 = vadd.f32 %v3669_v22, %v3018_v60  ;;  %v3030_v30 = vsel %vm781_vm5, %v4751_v19, 0.0  ;;  %v3678_v60 = vld [vmem:[%s752_s29] ss:$0 sm:$0xff]  ;;  %s3279_s29 = scalar_lea.vmem (!%p3687_p11), [#allocation2], %s3278_s20 }
 0x7fc   : > { %3031 = vadd.xlane.f32.xlu1 %v3030_v30 }
 0x7fd   : > { %v3033_v32 = vsel %vm781_vm5, %v4753_v54, 0.0 }
 0x7fe   : > { %3034 = vadd.xlane.f32.xlu0 %v3033_v32 }
 0x889   : > { %v3032_v31 = vpop.xlane.xlu1 %3031 }
 0x88a   : > { %v3036_v34 = vmul.f32 0.03125, %v3032_v31 }
 0x88b   : > { %v3035_v33 = vpop.xlane.xlu0 %3034 }
 0x88c   : > { %v3038_v7 = vsub.f32 %v4751_v19, %v3036_v34  ;;  %v3037_v36 = vmul.f32 0.03125, %v3035_v33 }
 0x88e   : > { %v3039_v38 = vsub.f32 %v4753_v54, %v3037_v36  ;;  %v3040_v39 = vmul.f32 %v3038_v7, %v3038_v7 }
 0x890   : > { %v3042_v26 = vsel %vm781_vm5, %v3040_v39, 0.0  ;;  %v3041_v41 = vmul.f32 %v3039_v38, %v3039_v38 }
 0x891   : > { %3043 = vadd.xlane.f32.xlu0 %v3042_v26 }
 0x892   : > { %v3045_v42 = vsel %vm781_vm5, %v3041_v41, 0.0 }
 0x895   : > { %3046 = vadd.xlane.f32.xlu0 %v3045_v42 }
 0x91e   : > { %v3044_v44 = vpop.xlane.xlu0 %3043 }
 0x91f   : > { %v3048_v8 = vmul.f32 0.03125, %v3044_v44 }
 0x921   : > { %v3050_v37 = vadd.f32 1e-05, %v3048_v8  ;;  %v3321_v8 = vld [vmem:[%s4914_s27] sm:$0xff] (!%p3687_p11) }
 0x922   : > { %v3047_v35 = vpop.xlane.xlu0 %3046 }
 0x923   : > { %4028 = vrsqrt.f32 %v3050_v37  ;;  %v3049_v18 = vmul.f32 0.03125, %v3047_v35  ;;  %v3322_v37 = vld [vmem:[%s4914_s27 + $0x8] sm:$0xff] (!%p3687_p11)  ;;  %v3323_v35 = vld [vmem:[%s4914_s27 + $0x10] sm:$0xff] (!%p3687_p11) }
 0x925   : > { %v3051_v45 = vadd.f32 1e-05, %v3049_v18  ;;  %v4126_v18 = vmov (!%p3687_p11), 0.0|0.0  }
 0x926   : > { %3907 = vmatprep.subr.bf16.mxu0 (!%p3687_p11), %v4126_v18 }
 0x927   : > { %4030 = vrsqrt.f32 %v3051_v45  ;;  %v3908_v45 = vpack.c.bf16 (!%p3687_p11), %v3322_v37, %v3321_v8 }
 0x92d   : > { %v4029_v56 = vpop.eup %4028 }
 0x92e   : > { %v3054_v29 = vmul.f32 %v4029_v56, %v3038_v7  ;;  %v3324_v56 = vld [vmem:[%s4914_s27 + $0x18] sm:$0xff] (!%p3687_p11) }
 0x930   : > { %v3062_v50 = vmul.f32 %v3670_v40, %v3054_v29  ;;  %v4128_v29 = vmov (!%p3687_p11), 0.0  }
 0x931   : > { %v4031_v46 = vpop.eup %4030 }
 0x932   : > { %v3055_v57 = vmul.f32 %v4031_v46, %v3039_v38  ;;  %v3070_v63 = vadd.f32 %v3671_v59, %v3062_v50 }
 0x934   : > { %v3063_v62 = vmul.f32 %v3670_v40, %v3055_v57  ;;  %v3911_v40 = vpack.c.bf16 (!%p3687_p11), %v3324_v56, %v3323_v35 }
 0x936   : > { %v3071_v0 = vadd.f32 %v3671_v59, %v3063_v62  ;;  %v3690_v62 = vld [vmem:[%s4915_s16] ss:$0 sm:$0xff] (!%p3687_p11) }
 0x938   : > { %v3076_v1 = vpack.c.bf16 %v3071_v0, %v3070_v63  ;;  %v3691_v0 = vld [vmem:[%s4916_s15] ss:$0 sm:$0xff] (!%p3687_p11) }
 0x93a   : > { %3873 = vmatmul.mubr.msk.bf16.vlgmr.msra.gmra.mrb[40].mxu0 %vm781_vm5, %v3076_v1 }
 0x93b   : > { %3904 = vmatprep.mubr.msk.f32.mxu0 (!%p3687_p11), %vm4127_vm13, %v4128_v29  ;;  %3909 = vmatpush3.bf16.msra.mxu0 (!%p3687_p11), %v3908_v45 }
 0x93c   : > { %3910 = vmatprep.subr.bf16.mxu0 (!%p3687_p11), %v4126_v18 }
 0x93f   : > { %3912 = vmatpush3.bf16.msra.mxu0 (!%p3687_p11), %v3911_v40 }
 0xa0d   : > { %v3133_v55 = vpop.f32.mrb[40].mxu0 }
 0xa0e   : > { %v3134_v14 = vadd.f32 %v3672_v13, %v3133_v55  ;;  %v3874_v48 = vpop.f32.mrb[41].mxu0 }
 0xa0f   : > { %v3136_v49 = vpop.f32.mrb[42].mxu0 }
 0xa10   : > { %v3676_v6 = vmul.f32 -1.702, %v3134_v14  ;;  %v3137_v58 = vadd.f32 %v3672_v13, %v3136_v49  ;;  %v3875_v52 = vpop.f32.mrb[43].mxu0 }
 0xa12   : > { %v3144_v9 = vmul.f32 1.442695, %v3676_v6  ;;  %v3677_v15 = vmul.f32 -1.702, %v3137_v58 }
 0xa14   : > { %4032 = vpow2.f32 %v3144_v9  ;;  %v3146_v16 = vmul.f32 1.442695, %v3677_v15 }
 0xa16   : > { %4034 = vpow2.f32 %v3146_v16 }
 0xa1e   : > { %v4033_v25 = vpop.eup %4032 }
 0xa1f   : > { %v3148_v17 = vadd.f32 1.0, %v4033_v25 }
 0xa20   : > { %v4035_v51 = vpop.eup %4034 }
 0xa21   : > { %4036 = vrcp.f32 %v3148_v17  ;;  %v3149_v22 = vadd.f32 1.0, %v4035_v51 }
 0xa23   : > { %4038 = vrcp.f32 %v3149_v22 }
 0xa2b   : > { %v4037_v20 = vpop.eup %4036 }
 0xa2c   : > { %v3154_v21 = vmul.f32 %v4037_v20, %v3134_v14 }
 0xa2d   : > { %v4039_v23 = vpop.eup %4038 }
 0xa2e   : > { %v3155_v24 = vmul.f32 %v4039_v23, %v3137_v58 }
 0xa30   : > { %v3172_v27 = vpack.c.bf16 %v3155_v24, %v3154_v21 }
 0xa32   : > { %3893 = vmatmul.mubr.bf16.vlgmr.msra.gmra.mrb[32].mxu1 %v3172_v27 }
 0xb05   : > { %v3262_v28 = vpop.f32.mrb[32].mxu1 }
 0xb06   : > { %v3263_v30 = vadd.f32 %v3678_v60, %v3262_v28  ;;  %v3894_v32 = vpop.f32.mrb[33].mxu1  ;;  %3276 = sbr.rel (%p3687_p11) target bundleno = 3371 (0xd2b), region = 96 }
 0xb07   : > { %v3265_v31 = vpop.f32.mrb[34].mxu1 }
 0xb08   : > { %v3269_v34 = vadd.f32 %v3263_v30, %v4751_v19  ;;  %v3266_v33 = vadd.f32 %v3678_v60, %v3265_v31  ;;  %v3895_v7 = vpop.f32.mrb[35].mxu1 }
 0xb0a   : > { %3271 = vst.msk [vmem:[#allocation2] sm:$0xff] %vm781_vm5, %v3269_v34  ;;  %v3270_v36 = vadd.f32 %v3266_v33, %v4753_v54 }
 0xb0c   : > { %3272 = vst.msk [vmem:[#allocation2 + $0x8] sm:$0xff] %vm781_vm5, %v3270_v36 }
 0xb13   : > { %v3280_v38 = vld [vmem:[%s3279_s29] sm:$0x1]  ;;  %v3689_v39 = vld [vmem:[%s3509_s17 + $0x8] sm:$0x1] }
 0xb14   : > { %v3287_v26 = vrot.slane %v3689_v39, 7 }
 0xb16   : > { %v3290_v19 = vsel %vm3289_vm11, %v3280_v38, %v3287_v26 }
 0xb17   : > { %v3294_v41 = vsel %vm3293_vm12, %v3290_v19, 0.0 }
 0xb18   : > { %3295 = vadd.xlane.f32.xlu0 %v3294_v41 }
 0xba5   : > { %v3296_v42 = vpop.xlane.xlu0 %3295 }
 0xba6   : > { %v3297_v53 = vmul.f32 0.03125, %v3296_v42 }
 0xba8   : > { %v3298_v54 = vsub.f32 %v3290_v19, %v3297_v53 }
 0xbaa   : > { %v3299_v43 = vmul.f32 %v3298_v54, %v3298_v54 }
 0xbac   : > { %v3300_v44 = vsel %vm3293_vm12, %v3299_v43, 0.0 }
 0xbad   : > { %3301 = vadd.xlane.f32.xlu0 %v3300_v44 }
 0xc3a   : > { %v3302_v46 = vpop.xlane.xlu0 %3301 }
 0xc3b   : > { %v3303_v50 = vmul.f32 0.03125, %v3302_v46 }
 0xc3d   : > { %v3304_v57 = vadd.f32 1e-05, %v3303_v50 }
 0xc3f   : > { %4042 = vrsqrt.f32 %v3304_v57 }
 0xc49   : > { %v4043_v59 = vpop.eup %4042 }
 0xc4a   : > { %v3306_v63 = vmul.f32 %v4043_v59, %v3298_v54 }
 0xc4c   : > { %v3313_v1 = vmul.f32 %v3690_v62, %v3306_v63 }
 0xc4e   : > { %v3320_v2 = vadd.f32 %v3691_v0, %v3313_v1 }
 0xc50   : > { %3905 = vmatmul.mubr.msk.f32.vlgmr.msra.gmra.mrb[0].mxu0 %vm781_vm5, %v3320_v2 }
 0xd23   : > { %v3394_v10 = vpop.f32.mrb[0].mxu0 }
 0xd24   : > { %v3405_v47 = vrot.slane %v3394_v10, %v3404_v11  ;;  %v3906_v12 = vpop.f32.mrb[1].mxu0 }
 0xd26   : > { %v3406_v13 = vcombine.high %v3405_v47, %v3405_v47  ;;  %v3413_v55 = vrot.slane %v3405_v47, %v3404_v11 }
 0xd28   : > { %v3420_v14 = vrot.slane %v3406_v13, %v3404_v11  ;;  %3424 = vst.msk [vmem:[#allocation6] sm:$0x1] %vm3423_vm14, %v3413_v55 }
 0xd2a   : > { %3425 = vst.msk [vmem:[#allocation6 + $0x1] sm:$0x1] %vm3423_vm14, %v3420_v14 }
 0xd2b PF: > { %s4917_s25 = sld [smem:[#allocation11_spill]]  ;;  %s4130_s29 = smov [#allocation6]  }
 0xd2c   : > { %s3435_s17 = sshll.u32 %s4130_s29, 4  ;;  %s3436_s17 = int_to_ptr.vmem [resolvable:$true] %s3435_s17 }
 0xd2d   : > { %s4056_s19 = scalar_lea.vmem %s3436_s17, 32  ;;  %p4063_p2 = scmp.lt.s32.totalorder %s3436_s17, %s3436_s17 }
 0xd2e   : > { %p4057_p13 = scmp.ne.s32.totalorder %s3436_s17, %s4056_s19  ;;  %p4064_p3 = scmp.lt.s32.totalorder %s4056_s19, %s4056_s19 }
 0xd30   : > { %p4065_p4 = por %p4064_p3, %p4063_p2 }
 0xd31   : > { %s4918_s20 = sadd.s32 4294967295, %s4917_s25  }
 0xd32   : > { %p4829_p12 = scmp.eq.s32.totalorder %s4918_s20, 1 }
 0xd34   : > { %p4058_p0 = pnand %p4057_p13, %p4829_p12 }
 0xd36   : > { %p4059_p1 = pneg %p4058_p0 }
 0xd38   : > { %p4066_p5 = pnand %p4065_p4, %p4059_p1 }
 0xd3a   : > { %4069 = shalt.err (!%p4066_p5)
}
 0xd3b   : > { %s4920_s18 = sld [smem:[#allocation22_spill]] }
 0xd41   : > { %s4070_s30 = scalar_lea.hbm %s4920_s18, 32 }
 0xd42   : > { %p4071_p6 = scmp.ne.s32.totalorder %s4920_s18, %s4070_s30  ;;  %p4076_p9 = scmp.lt.u32.totalorder %s4070_s30, %s4920_s18 }
 0xd44   : > { %p4072_p7 = pnand %p4071_p6, %p4829_p12 }
 0xd46   : > { %p4073_p8 = pneg %p4072_p7 }
 0xd48   : > { %p4078_p10 = pnand %p4076_p9, %p4073_p8 }
 0xd4a   : > { %4081 = shalt.err (!%p4078_p10)
}
 0xd4b   : > { %s4131_s7 = smov 1  }
 0xd4c   : > { %3914 = dma.vmem_to_hbm [thread:$0]  (%p4829_p12), %s3436_s17, 32, %s4920_s18, [#allocation7], %s4123_s24, %s4123_s24, %s4131_s7  }
 0xd4d   : > { %4097 = dma.done.wait (%p4829_p12), [#allocation7], 32  }
 0xd4e   : > { %4099 = vsyncadd (%p4829_p12), [#allocation7], 4294967264 }
 0xd4f PF: > { %s4921_s21 = sld [smem:[#allocation11_spill]]  ;;  %s4922_s19 = sld [smem:[#allocation10_spill]] }
 0xd50   : > { %s4923_s1 = sld [smem:[#allocation12_spill]] }
 0xd55   : > { %s35_s20 = sadd.s32 1, %s4921_s21  }
 0xd56   : > { %p32_p11 = scmp.ge.s32.totalorder %s35_s20, 4  }
 0xd58   :  { %34 = sbr.rel (!%p32_p11) target bundleno = 25 (0x19), region = 162 }
 0xd5f   :  { %3451 = vsyncpa [#allocation7], 1 }
 0xd60   :  { %3453 = vsyncpa [#allocation7 + $0x1], 1 }

</bundles_post_ra>
